<compile_context>
chip_gen: v7x
topology: tpu7x:2x2x1
jax: 0.10.0
libtpu: 0.0.40
codegen_flags: <defaults>
</compile_context>

<pallas_src>
import jax
import jax.numpy as jnp
from jax.experimental import pallas as pl
from jax.experimental.pallas import tpu as pltpu

EMBED_SIZE = 32   # nn.Linear(resnet.fc.in_features, embed_size) -> embed_size
C_IN = 3          # RGB input channels
LANE = 128        # TPU lane width; all channel dims padded to this
C1 = 128          # stem channels (stand-in, lane-dense)
C2 = 128          # stand-in for resnet.fc.in_features (2048 in real ResNet-152)
TH = 8            # output rows per grid step -> TH*W = 128 sublanes per tile


# ----------------------------- Pallas kernels ------------------------------

def _conv3x3_relu_kernel(xp_ref, w_ref, b_ref, o_ref):
    """One row-tile of 3x3 SAME conv + bias + ReLU as a single MXU matmul.

    xp_ref: (1, H+2, W+2, C)  bf16 zero-padded image (resident across row tiles)
    w_ref : (9*C, Cout)       bf16 filter, K ordered (dy, dx, cin)
    b_ref : (1, Cout)         f32 bias
    o_ref : (1, TH*W, Cout)   bf16 output row-tile (spatially flattened)
    """
    c = xp_ref.shape[3]
    w = xp_ref.shape[2] - 2
    th = o_ref.shape[1] // w
    row0 = pl.multiple_of(pl.program_id(1) * th, th)

    # Build the (TH*W, 9*C) im2col patch matrix in VMEM from 9 shifted views.
    taps = []
    for dy in range(3):
        for dx in range(3):
            t = xp_ref[0, pl.ds(row0 + dy, th), dx:dx + w, :]    # (th, w, c)
            taps.append(t.reshape(th * w, c))
    patches = jnp.concatenate(taps, axis=-1)                     # (th*w, 9*c)

    # Single K=9*C matmul on the MXU, f32 accumulation.
    acc = jnp.dot(patches, w_ref[...], preferred_element_type=jnp.float32)
    y = jnp.maximum(acc + b_ref[...], 0.0)                       # f32 bias+ReLU
    o_ref[0, :, :] = y.astype(o_ref.dtype)


def _pool_linear_kernel(feat_ref, w_ref, b_ref, o_ref):
    """Global avg-pool + Linear for one batch element.

    feat_ref: (1, H*W, C)  bf16 features
    w_ref   : (C, E_pad)   bf16 weight, already scaled by 1/(H*W)
    b_ref   : (1, E_pad)   f32 bias
    o_ref   : (1, 1, E_pad) f32 output
    """
    pooled = jnp.sum(feat_ref[0].astype(jnp.float32), axis=0, keepdims=True)
    out = jnp.dot(pooled.astype(w_ref.dtype), w_ref[...],
                  preferred_element_type=jnp.float32) + b_ref[...]
    o_ref[0] = out


# ------------------------------ JAX wrappers --------------------------------

def _prep_conv_weight(w_oihw, cin_pad):
    """PyTorch OIHW conv weight -> (9*cin_pad, Cout) bf16, K ordered (dy,dx,cin)."""
    cout, cin, kh, kw = w_oihw.shape
    w = jnp.pad(w_oihw, ((0, 0), (0, cin_pad - cin), (0, 0), (0, 0)))
    w = jnp.transpose(w, (2, 3, 1, 0)).reshape(kh * kw * cin_pad, cout)
    return w.astype(jnp.bfloat16)


def conv3x3_relu(x_nhwc, w_k, b, *, th=TH):
    """3x3 SAME conv (stride 1) + ReLU.  x: (N,H,W,C) bf16 with C % 128 == 0.
    Returns (N, H*W, Cout) bf16 (flattened spatial, channels on lanes)."""
    n, h, w, c = x_nhwc.shape
    cout = b.shape[-1]
    assert h % th == 0 and c % LANE == 0 and cout % LANE == 0
    xp = jnp.pad(x_nhwc, ((0, 0), (1, 1), (1, 1), (0, 0)))       # SAME zero pad
    return pl.pallas_call(
        _conv3x3_relu_kernel,
        out_shape=jax.ShapeDtypeStruct((n, h * w, cout), jnp.bfloat16),
        grid=(n, h // th),
        in_specs=[
            pl.BlockSpec((1, h + 2, w + 2, c), lambda i, r: (i, 0, 0, 0)),
            pl.BlockSpec((9 * c, cout), lambda i, r: (0, 0)),    # resident weight
            pl.BlockSpec((1, cout), lambda i, r: (0, 0)),        # resident bias
        ],
        out_specs=pl.BlockSpec((1, th * w, cout), lambda i, r: (i, r, 0)),
        compiler_params=pltpu.CompilerParams(
            dimension_semantics=("parallel", "parallel")),
    )(xp, w_k, b.reshape(1, cout).astype(jnp.float32))


def avgpool_linear(feat, w_lin, b_lin):
    """AdaptiveAvgPool2d(1) + reshape(N,-1) + Linear, fused; tiled over batch.
    feat: (N, H*W, C) bf16.  PyTorch Linear: x @ W.T + b."""
    n, hw, c = feat.shape
    e = w_lin.shape[0]
    e_pad = ((e + LANE - 1) // LANE) * LANE
    w_eff = (w_lin.T / hw).astype(jnp.bfloat16)                  # fold mean-pool scale
    w_eff = jnp.pad(w_eff, ((0, 0), (0, e_pad - e)))             # lane-pad E -> 128
    b_eff = jnp.pad(b_lin, (0, e_pad - e)).reshape(1, e_pad).astype(jnp.float32)
    out = pl.pallas_call(
        _pool_linear_kernel,
        out_shape=jax.ShapeDtypeStruct((n, 1, e_pad), jnp.float32),
        grid=(n,),
        in_specs=[
            pl.BlockSpec((1, hw, c), lambda i: (i, 0, 0)),
            pl.BlockSpec((c, e_pad), lambda i: (0, 0)),
            pl.BlockSpec((1, e_pad), lambda i: (0, 0)),
        ],
        out_specs=pl.BlockSpec((1, 1, e_pad), lambda i: (i, 0, 0)),
        compiler_params=pltpu.CompilerParams(
            dimension_semantics=("parallel",)),
    )(feat, w_eff, b_eff)
    return out[:, 0, :e]


def encoder_cnn_forward(images_nchw, params):
    """EncoderCNN.forward: frozen CNN features -> flatten -> linear."""
    n, _, h, w = images_nchw.shape
    x = jnp.transpose(images_nchw, (0, 2, 3, 1))                 # NCHW -> NHWC
    x = jnp.pad(x, ((0, 0), (0, 0), (0, 0), (0, LANE - x.shape[-1])))  # C: 3->128
    x = x.astype(jnp.bfloat16)

    w1k = _prep_conv_weight(params["w1"], LANE)
    w2k = _prep_conv_weight(params["w2"], C1)

    y1 = conv3x3_relu(x, w1k, params["b1"])                      # (N, H*W, C1)
    y1 = y1.reshape(n, h, w, C1)
    y2 = conv3x3_relu(y1, w2k, params["b2"])                     # (N, H*W, C2)

    features = jax.lax.stop_gradient(y2)                         # torch.no_grad()
    return avgpool_linear(features, params["w_lin"], params["b_lin"])


# -------------------------- params & pure-JAX ref ---------------------------

def init_params(key):
    ks = jax.random.split(key, 6)
    return {
        "w1": jax.random.normal(ks[0], (C1, C_IN, 3, 3), jnp.float32) * 0.1,
        "b1": jax.random.normal(ks[1], (C1,), jnp.float32) * 0.1,
        "w2": jax.random.normal(ks[2], (C2, C1, 3, 3), jnp.float32) * 0.1,
        "b2": jax.random.normal(ks[3], (C2,), jnp.float32) * 0.1,
        # PyTorch nn.Linear weight layout: (out_features, in_features)
        "w_lin": jax.random.normal(ks[4], (EMBED_SIZE, C2), jnp.float32) * 0.1,
        "b_lin": jax.random.normal(ks[5], (EMBED_SIZE,), jnp.float32) * 0.1,
    }


def reference_forward(images_nchw, p):
    """Pure-JAX reference with the same bf16-in / f32-acc quantization points."""
    x = jnp.transpose(images_nchw, (0, 2, 3, 1)).astype(jnp.bfloat16)
    for w, b in ((p["w1"], p["b1"]), (p["w2"], p["b2"])):
        w_hwio = jnp.transpose(w, (2, 3, 1, 0)).astype(jnp.bfloat16)
        y = jax.lax.conv_general_dilated(
            x, w_hwio, (1, 1), "SAME",
            dimension_numbers=("NHWC", "HWIO", "NHWC"),
            preferred_element_type=jnp.float32)
        x = jnp.maximum(y + b, 0.0).astype(jnp.bfloat16)
    n, h, w_, c = x.shape
    pooled = jnp.sum(x.astype(jnp.float32), axis=(1, 2))         # (N, C)
    w_eff = (p["w_lin"].T / (h * w_)).astype(jnp.bfloat16)
    return jnp.dot(pooled.astype(jnp.bfloat16), w_eff,
                   preferred_element_type=jnp.float32) + p["b_lin"]


if __name__ == "__main__":
    key = jax.random.PRNGKey(0)
    pkey, xkey = jax.random.split(key)
    params = init_params(pkey)
    images = jax.random.normal(xkey, (2, 3, 16, 16), jnp.float32)  # NCHW, like PyTorch

    out = jax.jit(encoder_cnn_forward)(images, params)
    out = jax.block_until_ready(out)

    ref = reference_forward(images, params)
    assert out.shape == (2, EMBED_SIZE), out.shape
    err = float(jnp.max(jnp.abs(out - ref)))
    assert err < 1e-2, err
    print("KERNEL_OK")
</pallas_src>

<mosaic_0001>
module attributes {stable_mosaic.version = 11 : i64} {
  func.func @_conv3x3_relu_kernel(%arg0: i32, %arg1: i32, %arg2: memref<1x18x18x128xbf16, #tpu.memory_space<vmem>>, %arg3: memref<1152x128xbf16, #tpu.memory_space<vmem>>, %arg4: memref<1x128xf32, #tpu.memory_space<vmem>>, %arg5: memref<1x128x128xbf16, #tpu.memory_space<vmem>>) attributes {dimension_semantics = [#tpu.dimension_semantics<parallel>, #tpu.dimension_semantics<parallel>], iteration_bounds = array<i64: 2, 2>, scalar_prefetch = 0 : i64, scratch_operands = 0 : i64, tpu.core_type = #tpu.core_type<tc>, window_params = [{transform_indices = @transform_0, window_bounds = array<i64: 1, 18, 18, 128>}, {pipeline_mode = #tpu.pipeline_mode<synchronous>, transform_indices = @transform_1, window_bounds = array<i64: 1152, 128>}, {pipeline_mode = #tpu.pipeline_mode<synchronous>, transform_indices = @transform_2, window_bounds = array<i64: 1, 128>}, {transform_indices = @transform_3, window_bounds = array<i64: 1, 128, 128>}]} {
    %c8_i32 = arith.constant 8 : i32
    %0 = arith.muli %arg1, %c8_i32 : i32
    %1 = tpu.assume_multiple %0, 8 : i32
    %c0_i32 = arith.constant 0 : i32
    %2 = arith.addi %1, %c0_i32 : i32
    %c0 = arith.constant 0 : index
    %3 = arith.index_cast %2 : i32 to index
    %c0_0 = arith.constant 0 : index
    %c0_1 = arith.constant 0 : index
    %4 = vector.load %arg2[%c0, %3, %c0_0, %c0_1] : memref<1x18x18x128xbf16, #tpu.memory_space<vmem>>, vector<1x8x16x128xbf16>
    %5 = vector.shape_cast %4 : vector<1x8x16x128xbf16> to vector<8x16x128xbf16>
    %6 = vector.shape_cast %5 : vector<8x16x128xbf16> to vector<128x128xbf16>
    %c0_i32_2 = arith.constant 0 : i32
    %7 = arith.addi %1, %c0_i32_2 : i32
    %c0_3 = arith.constant 0 : index
    %8 = arith.index_cast %7 : i32 to index
    %c1 = arith.constant 1 : index
    %c0_4 = arith.constant 0 : index
    %9 = vector.load %arg2[%c0_3, %8, %c1, %c0_4] : memref<1x18x18x128xbf16, #tpu.memory_space<vmem>>, vector<1x8x16x128xbf16>
    %10 = vector.shape_cast %9 : vector<1x8x16x128xbf16> to vector<8x16x128xbf16>
    %11 = vector.shape_cast %10 : vector<8x16x128xbf16> to vector<128x128xbf16>
    %c0_i32_5 = arith.constant 0 : i32
    %12 = arith.addi %1, %c0_i32_5 : i32
    %c0_6 = arith.constant 0 : index
    %13 = arith.index_cast %12 : i32 to index
    %c2 = arith.constant 2 : index
    %c0_7 = arith.constant 0 : index
    %14 = vector.load %arg2[%c0_6, %13, %c2, %c0_7] : memref<1x18x18x128xbf16, #tpu.memory_space<vmem>>, vector<1x8x16x128xbf16>
    %15 = vector.shape_cast %14 : vector<1x8x16x128xbf16> to vector<8x16x128xbf16>
    %16 = vector.shape_cast %15 : vector<8x16x128xbf16> to vector<128x128xbf16>
    %c1_i32 = arith.constant 1 : i32
    %17 = arith.addi %1, %c1_i32 : i32
    %c0_8 = arith.constant 0 : index
    %18 = arith.index_cast %17 : i32 to index
    %c0_9 = arith.constant 0 : index
    %c0_10 = arith.constant 0 : index
    %19 = vector.load %arg2[%c0_8, %18, %c0_9, %c0_10] : memref<1x18x18x128xbf16, #tpu.memory_space<vmem>>, vector<1x8x16x128xbf16>
    %20 = vector.shape_cast %19 : vector<1x8x16x128xbf16> to vector<8x16x128xbf16>
    %21 = vector.shape_cast %20 : vector<8x16x128xbf16> to vector<128x128xbf16>
    %c1_i32_11 = arith.constant 1 : i32
    %22 = arith.addi %1, %c1_i32_11 : i32
    %c0_12 = arith.constant 0 : index
    %23 = arith.index_cast %22 : i32 to index
    %c1_13 = arith.constant 1 : index
    %c0_14 = arith.constant 0 : index
    %24 = vector.load %arg2[%c0_12, %23, %c1_13, %c0_14] : memref<1x18x18x128xbf16, #tpu.memory_space<vmem>>, vector<1x8x16x128xbf16>
    %25 = vector.shape_cast %24 : vector<1x8x16x128xbf16> to vector<8x16x128xbf16>
    %26 = vector.shape_cast %25 : vector<8x16x128xbf16> to vector<128x128xbf16>
    %c1_i32_15 = arith.constant 1 : i32
    %27 = arith.addi %1, %c1_i32_15 : i32
    %c0_16 = arith.constant 0 : index
    %28 = arith.index_cast %27 : i32 to index
    %c2_17 = arith.constant 2 : index
    %c0_18 = arith.constant 0 : index
    %29 = vector.load %arg2[%c0_16, %28, %c2_17, %c0_18] : memref<1x18x18x128xbf16, #tpu.memory_space<vmem>>, vector<1x8x16x128xbf16>
    %30 = vector.shape_cast %29 : vector<1x8x16x128xbf16> to vector<8x16x128xbf16>
    %31 = vector.shape_cast %30 : vector<8x16x128xbf16> to vector<128x128xbf16>
    %c2_i32 = arith.constant 2 : i32
    %32 = arith.addi %1, %c2_i32 : i32
    %c0_19 = arith.constant 0 : index
    %33 = arith.index_cast %32 : i32 to index
    %c0_20 = arith.constant 0 : index
    %c0_21 = arith.constant 0 : index
    %34 = vector.load %arg2[%c0_19, %33, %c0_20, %c0_21] : memref<1x18x18x128xbf16, #tpu.memory_space<vmem>>, vector<1x8x16x128xbf16>
    %35 = vector.shape_cast %34 : vector<1x8x16x128xbf16> to vector<8x16x128xbf16>
    %36 = vector.shape_cast %35 : vector<8x16x128xbf16> to vector<128x128xbf16>
    %c2_i32_22 = arith.constant 2 : i32
    %37 = arith.addi %1, %c2_i32_22 : i32
    %c0_23 = arith.constant 0 : index
    %38 = arith.index_cast %37 : i32 to index
    %c1_24 = arith.constant 1 : index
    %c0_25 = arith.constant 0 : index
    %39 = vector.load %arg2[%c0_23, %38, %c1_24, %c0_25] : memref<1x18x18x128xbf16, #tpu.memory_space<vmem>>, vector<1x8x16x128xbf16>
    %40 = vector.shape_cast %39 : vector<1x8x16x128xbf16> to vector<8x16x128xbf16>
    %41 = vector.shape_cast %40 : vector<8x16x128xbf16> to vector<128x128xbf16>
    %c2_i32_26 = arith.constant 2 : i32
    %42 = arith.addi %1, %c2_i32_26 : i32
    %c0_27 = arith.constant 0 : index
    %43 = arith.index_cast %42 : i32 to index
    %c2_28 = arith.constant 2 : index
    %c0_29 = arith.constant 0 : index
    %44 = vector.load %arg2[%c0_27, %43, %c2_28, %c0_29] : memref<1x18x18x128xbf16, #tpu.memory_space<vmem>>, vector<1x8x16x128xbf16>
    %45 = vector.shape_cast %44 : vector<1x8x16x128xbf16> to vector<8x16x128xbf16>
    %46 = vector.shape_cast %45 : vector<8x16x128xbf16> to vector<128x128xbf16>
    %47 = tpu.concatenate %6, %11, %16, %21, %26, %31, %36, %41, %46 in 1 : vector<128x128xbf16>, vector<128x128xbf16>, vector<128x128xbf16>, vector<128x128xbf16>, vector<128x128xbf16>, vector<128x128xbf16>, vector<128x128xbf16>, vector<128x128xbf16>, vector<128x128xbf16> -> vector<128x1152xbf16>
    %c0_30 = arith.constant 0 : index
    %c0_31 = arith.constant 0 : index
    %48 = vector.load %arg3[%c0_30, %c0_31] : memref<1152x128xbf16, #tpu.memory_space<vmem>>, vector<1152x128xbf16>
    %cst = arith.constant dense<0.000000e+00> : vector<128x128xf32>
    %49 = tpu.matmul %47, %48, %cst {dimension_numbers = #tpu.dot_dimension_numbers<[1], [0], [0], [1], [0, 0, 1, 1], [], []>} : vector<128x1152xbf16>, vector<1152x128xbf16>, vector<128x128xf32> -> vector<128x128xf32>
    %c0_32 = arith.constant 0 : index
    %c0_33 = arith.constant 0 : index
    %50 = vector.load %arg4[%c0_32, %c0_33] : memref<1x128xf32, #tpu.memory_space<vmem>>, vector<1x128xf32>
    %51 = vector.broadcast %50 : vector<1x128xf32> to vector<128x128xf32>
    %52 = arith.addf %49, %51 : vector<128x128xf32>
    %cst_34 = arith.constant 0.000000e+00 : f32
    %53 = vector.broadcast %cst_34 : f32 to vector<128x128xf32>
    %54 = arith.maximumf %52, %53 : vector<128x128xf32>
    %55 = arith.truncf %54 : vector<128x128xf32> to vector<128x128xbf16>
    %c0_35 = arith.constant 0 : index
    %c0_36 = arith.constant 0 : index
    %c0_37 = arith.constant 0 : index
    %56 = vector.load %arg5[%c0_35, %c0_36, %c0_37] : memref<1x128x128xbf16, #tpu.memory_space<vmem>>, vector<1x128x128xbf16>
    %57 = vector.shape_cast %56 : vector<1x128x128xbf16> to vector<128x128xbf16>
    %58 = vector.shape_cast %55 : vector<128x128xbf16> to vector<1x128x128xbf16>
    tpu.vector_store %arg5[%c0_35, %c0_36, %c0_37], %58 {strides = array<i32>} : memref<1x128x128xbf16, #tpu.memory_space<vmem>>, vector<1x128x128xbf16>,
    return
  }
  func.func @transform_0(%arg0: i32, %arg1: i32) -> (i32, i32, i32, i32) {
    %c0_i32 = arith.constant 0 : i32
    %c0_i32_0 = arith.constant 0 : i32
    %c0_i32_1 = arith.constant 0 : i32
    %c0_i32_2 = arith.constant 0 : i32
    return %arg0, %c0_i32, %c0_i32_0, %c0_i32_1 : i32, i32, i32, i32
  }
  func.func @transform_1(%arg0: i32, %arg1: i32) -> (i32, i32) {
    %c0_i32 = arith.constant 0 : i32
    %c0_i32_0 = arith.constant 0 : i32
    %c0_i32_1 = arith.constant 0 : i32
    return %c0_i32, %c0_i32_0 : i32, i32
  }
  func.func @transform_2(%arg0: i32, %arg1: i32) -> (i32, i32) {
    %c0_i32 = arith.constant 0 : i32
    %c0_i32_0 = arith.constant 0 : i32
    %c0_i32_1 = arith.constant 0 : i32
    return %c0_i32, %c0_i32_0 : i32, i32
  }
  func.func @transform_3(%arg0: i32, %arg1: i32) -> (i32, i32, i32) {
    %c0_i32 = arith.constant 0 : i32
    %c0_i32_0 = arith.constant 0 : i32
    return %arg0, %arg1, %c0_i32 : i32, i32, i32
  }
}

module attributes {stable_mosaic.version = 11 : i64} {
  func.func @_pool_linear_kernel(%arg0: i32, %arg1: memref<1x256x128xbf16, #tpu.memory_space<vmem>>, %arg2: memref<128x128xbf16, #tpu.memory_space<vmem>>, %arg3: memref<1x128xf32, #tpu.memory_space<vmem>>, %arg4: memref<1x1x128xf32, #tpu.memory_space<vmem>>) attributes {dimension_semantics = [#tpu.dimension_semantics<parallel>], iteration_bounds = array<i64: 2>, scalar_prefetch = 0 : i64, scratch_operands = 0 : i64, tpu.core_type = #tpu.core_type<tc>, window_params = [{transform_indices = @transform_0, window_bounds = array<i64: 1, 256, 128>}, {pipeline_mode = #tpu.pipeline_mode<synchronous>, transform_indices = @transform_1, window_bounds = array<i64: 128, 128>}, {pipeline_mode = #tpu.pipeline_mode<synchronous>, transform_indices = @transform_2, window_bounds = array<i64: 1, 128>}, {transform_indices = @transform_3, window_bounds = array<i64: 1, 1, 128>}]} {
    %c0 = arith.constant 0 : index
    %c0_0 = arith.constant 0 : index
    %c0_1 = arith.constant 0 : index
    %0 = vector.load %arg1[%c0, %c0_0, %c0_1] : memref<1x256x128xbf16, #tpu.memory_space<vmem>>, vector<1x256x128xbf16>
    %1 = vector.shape_cast %0 : vector<1x256x128xbf16> to vector<256x128xbf16>
    %2 = arith.extf %1 : vector<256x128xbf16> to vector<256x128xf32>
    %cst = arith.constant dense<0.000000e+00> : vector<128xf32>
    %3 = vector.multi_reduction <add>, %2, %cst [0] : vector<256x128xf32> to vector<128xf32>
    %4 = vector.shape_cast %3 : vector<128xf32> to vector<1x128xf32>
    %5 = arith.truncf %4 : vector<1x128xf32> to vector<1x128xbf16>
    %c0_2 = arith.constant 0 : index
    %c0_3 = arith.constant 0 : index
    %6 = vector.load %arg2[%c0_2, %c0_3] : memref<128x128xbf16, #tpu.memory_space<vmem>>, vector<128x128xbf16>
    %cst_4 = arith.constant dense<0.000000e+00> : vector<1x128xf32>
    %7 = tpu.matmul %5, %6, %cst_4 {dimension_numbers = #tpu.dot_dimension_numbers<[1], [0], [0], [1], [0, 0, 1, 1], [], []>} : vector<1x128xbf16>, vector<128x128xbf16>, vector<1x128xf32> -> vector<1x128xf32>
    %c0_5 = arith.constant 0 : index
    %c0_6 = arith.constant 0 : index
    %8 = vector.load %arg3[%c0_5, %c0_6] : memref<1x128xf32, #tpu.memory_space<vmem>>, vector<1x128xf32>
    %9 = arith.addf %7, %8 : vector<1x128xf32>
    %c0_7 = arith.constant 0 : index
    %c0_8 = arith.constant 0 : index
    %c0_9 = arith.constant 0 : index
    %10 = vector.load %arg4[%c0_7, %c0_8, %c0_9] : memref<1x1x128xf32, #tpu.memory_space<vmem>>, vector<1x1x128xf32>
    %11 = vector.shape_cast %10 : vector<1x1x128xf32> to vector<1x128xf32>
    %12 = vector.shape_cast %9 : vector<1x128xf32> to vector<1x1x128xf32>
    tpu.vector_store %arg4[%c0_7, %c0_8, %c0_9], %12 {strides = array<i32>} : memref<1x1x128xf32, #tpu.memory_space<vmem>>, vector<1x1x128xf32>,
    return
  }
  func.func @transform_0(%arg0: i32) -> (i32, i32, i32) {
    %c0_i32 = arith.constant 0 : i32
    %c0_i32_0 = arith.constant 0 : i32
    %c0_i32_1 = arith.constant 0 : i32
    return %arg0, %c0_i32, %c0_i32_0 : i32, i32, i32
  }
  func.func @transform_1(%arg0: i32) -> (i32, i32) {
    %c0_i32 = arith.constant 0 : i32
    %c0_i32_0 = arith.constant 0 : i32
    %c0_i32_1 = arith.constant 0 : i32
    return %c0_i32, %c0_i32_0 : i32, i32
  }
  func.func @transform_2(%arg0: i32) -> (i32, i32) {
    %c0_i32 = arith.constant 0 : i32
    %c0_i32_0 = arith.constant 0 : i32
    %c0_i32_1 = arith.constant 0 : i32
    return %c0_i32, %c0_i32_0 : i32, i32
  }
  func.func @transform_3(%arg0: i32) -> (i32, i32, i32) {
    %c0_i32 = arith.constant 0 : i32
    %c0_i32_0 = arith.constant 0 : i32
    %c0_i32_1 = arith.constant 0 : i32
    return %arg0, %c0_i32, %c0_i32_0 : i32, i32, i32
  }
}

</mosaic_0001>

<bundles_post_ra>
// kernel: encoder_cnn_forward.5
= control target key start
LH: loop header
LB: loop body
LE: loop exit
PB: predicated region body
PF: predicated region fallthrough
CT: control target
= control target key end

     0   :  { %8 = vsyncpa [#allocation3], 0  ;;  %s852_s0 = inlined_call_operand.vmem [shape: bf16[2,256,128], index: 0, kind: input, shape index: {}]   ;;  %s853_s1 = inlined_call_operand.vmem [shape: bf16[128,128], index: 1, kind: input, shape index: {}]   ;;  %s854_s2 = inlined_call_operand.vmem [shape: f32[1,128], index: 2, kind: input, shape index: {}]   ;;  %s855_s3 = inlined_call_operand.hbm [shape: f32[2,1,128], index: 3, kind: output, shape index: {}]  }
   0x1   :  { %10 = vsyncpa [#allocation3 + $0x1], 0  ;;  %s707_s12 = smov 0   ;;  %s709_s13 = smov 0  }
   0x2   :  { %s711_s14 = smov 0   ;;  %s713_s15 = smov 0  }
   0x3 LB: > { %s728_s16 = sadd.s32 4294967295, %s682_s15   ;;  %s445_s17 = sadd.s32 4294967294, %s682_s15   ;;  %s682_s15 = sphi %s713_s15, %s861_s15   ;;  %s678_s14 = sphi %s711_s14, %s860_s14   ;;  %s674_s13 = sphi %s709_s13, %s859_s13   ;;  %s670_s12 = sphi %s707_s12, %s858_s12  }
   0x4   : > { %s732_s18 = sadd.s32 1, %s682_s15   ;;  %s91_s19 = sadd.s32 1, %s678_s14 }
   0x5   : > { %s88_s20 = ssub.s32 %s682_s15, %s732_s18  ;;  %p101_p0 = scmp.ne.s32.totalorder %s678_s14, %s674_s13 }
   0x6   : > { %p89_p1 = scmp.eq.s32.totalorder %s88_s20, 0  ;;  %p102_p2 = scmp.eq.s32.totalorder %s728_s16, 1 }
   0x7   : > { %p107_p3 = scmp.ne.s32.totalorder %s674_s13, %s670_s12  ;;  %p108_p4 = scmp.eq.s32.totalorder %s445_s17, 1 }
   0x8   : > { %s743_s21 = scalar_select %p89_p1, %s678_s14, %s91_s19  }
   0x9   : > { %p745_p5 = por %p102_p2, %p101_p0  ;;  %p749_p6 = por %p108_p4, %p107_p3 }
   0xa   : > { %p448_p7 = scmp.ge.s32.totalorder %s682_s15, 1  ;;  %p140_p8 = scmp.lt.s32.totalorder %s682_s15, 3 }
   0xc   : > { %p141_p9 = pnand %p448_p7, %p140_p8 }
   0xd   : > { %v612_v0 = vld [vmem:[%s853_s1] sm:$0xff] (!%p141_p9)   ;;  %v684_v1 = vmov (!%p141_p9), 0.0   ;;  %v613_v2 = vld [vmem:[%s853_s1 + $0x8] sm:$0xff] (!%p141_p9)   ;;  %vm685_vm0 = vmmov (!%p141_p9), 0   ;;  %p163_p10 = scmp.lt.s32.totalorder (!%p141_p9), %s728_s16, 1  ;;  %v614_v3 = vld [vmem:[%s853_s1 + $0x10] sm:$0xff] (!%p141_p9)  }
   0xe   : > { %144 = sbr.rel (%p141_p9) target bundleno = 332 (0x14c), region = 32  ;;  %551 = vmatprep.subr.bf16.mxu0 (!%p141_p9), %v684_v1  ;;  %567 = vmatprep.mubr.msk.bf16.mxu0 (!%p141_p9), %vm685_vm0, %v684_v1  ;;  %v615_v4 = vld [vmem:[%s853_s1 + $0x18] sm:$0xff] (!%p141_p9)   ;;  %v616_v9 = vld [vmem:[%s853_s1 + $0x20] sm:$0xff] (!%p141_p9)   ;;  %v617_v14 = vld [vmem:[%s853_s1 + $0x28] sm:$0xff] (!%p141_p9)   ;;  %s161_s27 = sand.u32 (!%p141_p9), 1, %s674_s13  }
   0xf   : > { %552 = vmatpush3.bf16.msra.mxu0 (!%p141_p9), %v612_v0  ;;  %v618_v20 = vld [vmem:[%s853_s1 + $0x30] sm:$0xff] (!%p141_p9)   ;;  %v619_v26 = vld [vmem:[%s853_s1 + $0x38] sm:$0xff] (!%p141_p9)   ;;  %s459_s30 = sshll.u32 (!%p141_p9), %s728_s16, 4  ;;  %s378_s9 = scalar_lea.sflag (!%p141_p9), [#allocation3], %s161_s27 }
  0x10   : > { %553 = vmatprep.subr.bf16.mxu0 (!%p141_p9), %v684_v1  ;;  %s810_s8 = scalar_lea.hbm (!%p141_p9), %s855_s3, %s459_s30  ;;  %s686_s10 = smov (!%p141_p9), [#allocation2]  }
  0x11   : > { %s624_s11 = sshll.u32 (!%p141_p9), %s686_s10, 4  ;;  %s625_s11 = int_to_ptr.vmem [resolvable:$false] %s624_s11 }
  0x12   : > { %s626_s17 = scalar_lea.vmem (!%p141_p9), %s625_s11, 32 }
  0x13   : > { %554 = vmatpush3.bf16.msra.mxu0 (!%p141_p9), %v613_v2 }
  0x14   : > { %555 = vmatprep.subr.bf16.mxu0 (!%p141_p9), %v684_v1 }
  0x15   : > { %s164_s28 = scalar_select %p163_p10, %s728_s16, 1 }
  0x17   : > { %s462_s4 = sshll.u32 %s164_s28, 7  ;;  %556 = vmatpush3.bf16.msra.mxu0 %v614_v3 }
  0x18   : > { %s769_s7 = scalar_lea.vmem %s852_s0, %s462_s4  ;;  %557 = vmatprep.subr.bf16.mxu0 %v684_v1  ;;  %s162_s4 = scalar_lea.vmem [#allocation2], %s161_s27 }
  0x19   : > { %v464_v5 = vld [vmem:[%s769_s7] sm:$0xff]   ;;  %v527_v6 = vld [vmem:[%s769_s7 + $0x8] sm:$0xff]   ;;  %v528_v11 = vld [vmem:[%s769_s7 + $0x10] sm:$0xff]   ;;  %s390_s5 = sshll.u32 %s162_s4, 4  ;;  %s812_s5 = int_to_ptr.vmem [resolvable:$true] %s390_s5 }
  0x1a   : > { %v465_v7 = vunpack.c.l.bf16 %v464_v5  ;;  %v466_v8 = vunpack.c.h.bf16 %v464_v5  ;;  %v469_v10 = vunpack.c.l.bf16 %v527_v6  ;;  %v470_v12 = vunpack.c.h.bf16 %v527_v6  ;;  %v529_v17 = vld [vmem:[%s769_s7 + $0x18] sm:$0xff]   ;;  %v530_v23 = vld [vmem:[%s769_s7 + $0x20] sm:$0xff]   ;;  %v531_v29 = vld [vmem:[%s769_s7 + $0x28] sm:$0xff]   ;;  %s620_s16 = scalar_lea.vmem %s812_s5, 16  ;;  %p627_p0 = scmp.lt.s32.totalorder %s812_s5, %s625_s11 }
  0x1b   : > { %558 = vmatpush3.bf16.msra.mxu0 %v615_v4  ;;  %v473_v15 = vunpack.c.l.bf16 %v528_v11  ;;  %v474_v18 = vunpack.c.h.bf16 %v528_v11  ;;  %v477_v21 = vunpack.c.l.bf16 %v529_v17  ;;  %v478_v24 = vunpack.c.h.bf16 %v529_v17  ;;  %v532_v34 = vld [vmem:[%s769_s7 + $0x30] sm:$0xff]   ;;  %v533_v39 = vld [vmem:[%s769_s7 + $0x38] sm:$0xff]   ;;  %v534_v44 = vld [vmem:[%s769_s7 + $0x40] sm:$0xff]   ;;  %p621_p11 = scmp.ne.s32.totalorder %s812_s5, %s620_s16  ;;  %p628_p1 = scmp.lt.s32.totalorder %s626_s17, %s620_s16 }
  0x1c   : > { %559 = vmatprep.subr.bf16.mxu0 %v684_v1  ;;  %v233_v13 = vadd.f32 %v466_v8, %v465_v7  ;;  %v481_v27 = vunpack.c.l.bf16 %v530_v23  ;;  %v482_v30 = vunpack.c.h.bf16 %v530_v23  ;;  %v485_v32 = vunpack.c.l.bf16 %v531_v29  ;;  %v535_v49 = vld [vmem:[%s769_s7 + $0x48] sm:$0xff]   ;;  %v536_v54 = vld [vmem:[%s769_s7 + $0x50] sm:$0xff]   ;;  %v537_v59 = vld [vmem:[%s769_s7 + $0x58] sm:$0xff]  }
  0x1d   : > { %v486_v35 = vunpack.c.h.bf16 %v531_v29  ;;  %v489_v37 = vunpack.c.l.bf16 %v532_v34  ;;  %v490_v40 = vunpack.c.h.bf16 %v532_v34  ;;  %v493_v42 = vunpack.c.l.bf16 %v533_v39  ;;  %v538_v0 = vld [vmem:[%s769_s7 + $0x60] sm:$0xff]   ;;  %v539_v5 = vld [vmem:[%s769_s7 + $0x68] sm:$0xff]   ;;  %p622_p12 = pnand %p621_p11, %p745_p5  ;;  %p629_p2 = por %p628_p1, %p627_p0 }
  0x1e   : > { %v234_v16 = vadd.f32 %v469_v10, %v233_v13  ;;  %v494_v45 = vunpack.c.h.bf16 %v533_v39  ;;  %v497_v47 = vunpack.c.l.bf16 %v534_v44  ;;  %v498_v50 = vunpack.c.h.bf16 %v534_v44  ;;  %v540_v10 = vld [vmem:[%s769_s7 + $0x70] sm:$0xff]  }
  0x1f   : > { %560 = vmatpush3.bf16.msra.mxu0 %v616_v9  ;;  %v501_v52 = vunpack.c.l.bf16 %v535_v49  ;;  %v502_v55 = vunpack.c.h.bf16 %v535_v49  ;;  %v505_v57 = vunpack.c.l.bf16 %v536_v54  ;;  %v506_v60 = vunpack.c.h.bf16 %v536_v54  ;;  %p623_p13 = pneg %p622_p12 }
  0x20   : > { %561 = vmatprep.subr.bf16.mxu0 %v684_v1  ;;  %v235_v19 = vadd.f32 %v470_v12, %v234_v16  ;;  %v509_v62 = vunpack.c.l.bf16 %v537_v59  ;;  %v513_v3 = vunpack.c.l.bf16 %v538_v0  ;;  %v514_v6 = vunpack.c.h.bf16 %v538_v0 }
  0x21   : > { %v517_v8 = vunpack.c.l.bf16 %v539_v5  ;;  %v518_v11 = vunpack.c.h.bf16 %v539_v5  ;;  %v521_v13 = vunpack.c.l.bf16 %v540_v10  ;;  %v522_v16 = vunpack.c.h.bf16 %v540_v10  ;;  %p630_p3 = pnand %p629_p2, %p623_p13 }
  0x22   : > { %v236_v22 = vadd.f32 %v473_v15, %v235_v19  ;;  %v541_v15 = vld [vmem:[%s769_s7 + $0x78] sm:$0xff]  }
  0x23   : > { %562 = vmatpush3.bf16.msra.mxu0 %v617_v14 }
  0x24   : > { %563 = vmatprep.subr.bf16.mxu0 %v684_v1  ;;  %v237_v25 = vadd.f32 %v474_v18, %v236_v22  ;;  %v525_v18 = vunpack.c.l.bf16 %v541_v15 }
  0x26   : > { %v238_v28 = vadd.f32 %v477_v21, %v237_v25 }
  0x27   : > { %564 = vmatpush3.bf16.msra.mxu0 %v618_v20  ;;  %v526_v20 = vunpack.c.h.bf16 %v541_v15 }
  0x28   : > { %565 = vmatprep.subr.bf16.mxu0 %v684_v1  ;;  %v239_v31 = vadd.f32 %v478_v24, %v238_v28  ;;  %v510_v1 = vunpack.c.h.bf16 %v537_v59 }
  0x2a   : > { %v240_v33 = vadd.f32 %v481_v27, %v239_v31  ;;  %v287_v31 = vld [vmem:[%s854_s2] sm:$0x1] }
  0x2b   : > { %566 = vmatpush3.bf16.msra.mxu0 %v619_v26 }
  0x2c   : > { %v241_v36 = vadd.f32 %v482_v30, %v240_v33 }
  0x2e   : > { %v242_v38 = vadd.f32 %v485_v32, %v241_v36 }
  0x30   : > { %v243_v41 = vadd.f32 %v486_v35, %v242_v38 }
  0x32   : > { %v244_v43 = vadd.f32 %v489_v37, %v243_v41 }
  0x34   : > { %v245_v46 = vadd.f32 %v490_v40, %v244_v43 }
  0x36   : > { %v246_v48 = vadd.f32 %v493_v42, %v245_v46 }
  0x38   : > { %v247_v51 = vadd.f32 %v494_v45, %v246_v48 }
  0x3a   : > { %v248_v53 = vadd.f32 %v497_v47, %v247_v51 }
  0x3c   : > { %v249_v56 = vadd.f32 %v498_v50, %v248_v53 }
  0x3e   : > { %v250_v58 = vadd.f32 %v501_v52, %v249_v56 }
  0x40   : > { %v251_v61 = vadd.f32 %v502_v55, %v250_v58 }
  0x42   : > { %v252_v63 = vadd.f32 %v505_v57, %v251_v61 }
  0x44   : > { %v253_v2 = vadd.f32 %v506_v60, %v252_v63 }
  0x46   : > { %v254_v4 = vadd.f32 %v509_v62, %v253_v2 }
  0x48   : > { %v255_v7 = vadd.f32 %v510_v1, %v254_v4 }
  0x4a   : > { %v256_v9 = vadd.f32 %v513_v3, %v255_v7 }
  0x4c   : > { %v257_v12 = vadd.f32 %v514_v6, %v256_v9 }
  0x4e   : > { %v258_v14 = vadd.f32 %v517_v8, %v257_v12 }
  0x50   : > { %v259_v17 = vadd.f32 %v518_v11, %v258_v14 }
  0x52   : > { %v260_v19 = vadd.f32 %v521_v13, %v259_v17 }
  0x54   : > { %v261_v21 = vadd.f32 %v522_v16, %v260_v19 }
  0x56   : > { %v262_v22 = vadd.f32 %v525_v18, %v261_v21 }
  0x58   : > { %v263_v23 = vadd.f32 %v526_v20, %v262_v22 }
  0x5a   : > { %v264_v24 = vrot.slane %v263_v23, 4 }
  0x5c   : > { %v265_v25 = vadd.f32 %v264_v24, %v263_v23 }
  0x5e   : > { %v266_v26 = vrot.slane %v265_v25, 2 }
  0x60   : > { %v267_v27 = vadd.f32 %v266_v26, %v265_v25 }
  0x62   : > { %v268_v28 = vrot.slane %v267_v27, 1 }
  0x64   : > { %v269_v29 = vadd.f32 %v268_v28, %v267_v27 }
  0x66   : > { %v270_v30 = vpack.c.bf16 %v269_v29, %v269_v29 }
  0x68   : > { %568 = vmatmul.mubr.bf16.vlgmr.msra.gmra.mrb[0].mxu0 %v270_v30 }
 0x13b   : > { %v370_v32 = vpop.f32.mrb[0].mxu0 }
 0x13c   : > { %v371_v33 = vadd.f32 %v370_v32, %v287_v31  ;;  %v569_v34 = vpop.f32.mrb[1].mxu0 }
 0x13d   : > { %v373_v35 = vpop.f32.mrb[2].mxu0 }
 0x13e   : > { %376 = vst [vmem:[%s162_s4] sm:$0x1] %v371_v33  ;;  %v570_v36 = vpop.f32.mrb[3].mxu0 }
 0x13f   : > { %633 = shalt.err (!%p630_p3)
}
 0x140   : > { %s634_s19 = scalar_lea.hbm %s810_s8, 16  ;;  %s638_s25 = scalar_lea.hbm %s855_s3, 32 }
 0x141   : > { %p635_p4 = scmp.ne.s32.totalorder %s810_s8, %s634_s19  ;;  %p639_p9 = scmp.lt.u32.totalorder %s810_s8, %s855_s3 }
 0x142   : > { %p640_p10 = scmp.lt.u32.totalorder %s638_s25, %s634_s19  ;;  %p642_p12 = scmp.lt.u32.totalorder %s634_s19, %s810_s8 }
 0x143   : > { %p636_p7 = pnand %p635_p4, %p745_p5 }
 0x144   : > { %p641_p11 = por %p640_p10, %p639_p9 }
 0x145   : > { %p637_p8 = pneg %p636_p7 }
 0x146   : > { %p643_p13 = por %p642_p12, %p641_p11 }
 0x148   : > { %p644_p0 = pnand %p643_p13, %p637_p8 }
 0x14a   : > { %647 = shalt.err (!%p644_p0)
}
 0x14b   : > { %571 = dma.vmem_to_hbm [thread:$0]  (%p745_p5), %s812_s5, 16, %s810_s8, %s378_s9  }
 0x14c PF: > { %p577_p1 = scmp.ge.s32.totalorder %s682_s15, 2  ;;  %s402_s28 = sand.u32 1, %s670_s12  }
 0x14d   : > { %s403_s29 = scalar_lea.sflag [#allocation3], %s402_s28 }
 0x14e   : > { %p574_p2 = pnand %p577_p1, %p749_p6 }
 0x150   : > { %665 = dma.done.wait (!%p574_p2), %s403_s29, 16  }
 0x151   : > { %667 = vsyncadd (!%p574_p2), %s403_s29, 4294967280  ;;  %p13_p3 = scmp.ge.s32.totalorder %s732_s18, 4   ;;  %s858_s12 = smov %s674_s13 }
 0x152   : > { %s859_s13 = smov %s678_s14  ;;  %s860_s14 = smov %s743_s21 }
 0x153   : > { %s861_s15 = smov %s732_s18  ;;  %15 = sbr.rel (!%p13_p3) target bundleno = 3 (0x3), region = 67 }
 0x15a   :  { %407 = vsyncpa [#allocation3], 1 }
 0x15b   :  { %409 = vsyncpa [#allocation3 + $0x1], 1 }

// kernel: encoder_cnn_forward.3
= control target key start
LH: loop header
LB: loop body
LE: loop exit
PB: predicated region body
PF: predicated region fallthrough
CT: control target
= control target key end

     0   :  { %s3543_s12 = smov 0   ;;  %s3545_s13 = smov 0   ;;  %s4665_s0 = inlined_call_operand.vmem [shape: bf16[2,18,18,128], index: 0, kind: input, shape index: {}]   ;;  %s4666_s1 = inlined_call_operand.vmem [shape: bf16[1152,128], index: 1, kind: input, shape index: {}]   ;;  %s4667_s2 = inlined_call_operand.vmem [shape: f32[1,128], index: 2, kind: input, shape index: {}]   ;;  %s4668_s3 = inlined_call_operand.vmem [shape: bf16[2,256,128], index: 3, kind: output, shape index: {}]  }
   0x1   :  { %s3547_s14 = smov 0   ;;  %s3549_s15 = smov 0  }
   0x2   :  { %s3551_s16 = smov 0  }
   0x3 LB: > { %s22_s17 = sadd.s32 1, %s3513_s14  ;;  %s25_s18 = sadd.s32 1, %s3517_s15  ;;  %s3521_s16 = sphi %s3551_s16, %s13_s16   ;;  %s3517_s15 = sphi %s3549_s15, %s4680_s15   ;;  %s3513_s14 = sphi %s3547_s14, %s4679_s14   ;;  %s3509_s13 = sphi %s3545_s13, %s4678_s13   ;;  %s3505_s12 = sphi %s3543_s12, %s4677_s12  }
   0x4   : > { %p23_p0 = scmp.ge.s32.totalorder %s22_s17, 2  ;;  %p2699_p1 = scmp.ge.s32.totalorder %s3521_s16, 1 }
   0x5   : > { %p151_p2 = scmp.lt.s32.totalorder %s3521_s16, 5 }
   0x6   : > { %s4682_s17 = smov (%p23_p0, %s22_s17), 0  ;;  %s4684_s18 = smov (!%p23_p0, %s25_s18), %s3517_s15 }
   0x7   : > { %p152_p3 = pnand %p2699_p1, %p151_p2  ;;  %p27_p4 = scmp.ge.s32.totalorder %s4684_s18, 2 }
   0x8   : > { %v3387_v0 = vld [vmem:[%s4666_s1 + $0x40] sm:$0xff] (!%p152_p3)   ;;  %v3391_v4 = vld [vmem:[%s4666_s1 + $0x48] sm:$0xff] (!%p152_p3)   ;;  %v3395_v8 = vld [vmem:[%s4666_s1 + $0x50] sm:$0xff] (!%p152_p3)   ;;  %p179_p5 = scmp.lt.s32.totalorder (!%p152_p3), %s3509_s13, 1  ;;  %s2962_s5 = smul.u32 (!%p152_p3), 96, %s3505_s12  ;;  %vm450_vm2 = vcmask (!%p152_p3), 1042432  }
   0x9   : > { %s4686_s18 = smov (%p27_p4, %s4684_s18), 0  ;;  %155 = sbr.rel (%p152_p3) target bundleno = 407 (0x197), region = 32 }
   0xa   : > { %v3388_v1 = vld [vmem:[%s4666_s1 + $0xc0] sm:$0xff] (!%p152_p3)   ;;  %3026 = vmatprep.subr.bf16.mxu0 (!%p152_p3), %v3387_v0  ;;  %v3392_v5 = vld [vmem:[%s4666_s1 + $0xc8] sm:$0xff] (!%p152_p3)   ;;  %v3396_v9 = vld [vmem:[%s4666_s1 + $0xd0] sm:$0xff] (!%p152_p3)   ;;  %vm223_vm0 = vsmask.f32 (!%p152_p3), 3328  ;;  %vm451_vm3 = vcmask (!%p152_p3), 1046532  }
   0xb   : > { %v3389_v2 = vld [vmem:[%s4666_s1] sm:$0xff] (!%p152_p3)   ;;  %3090 = vmatprep.subr.bf16.mxu1 (!%p152_p3), %v3388_v1  ;;  %v3393_v6 = vld [vmem:[%s4666_s1 + $0x8] sm:$0xff] (!%p152_p3)   ;;  %v3397_v10 = vld [vmem:[%s4666_s1 + $0x10] sm:$0xff] (!%p152_p3)   ;;  %vm224_vm1 = vsmask.f32 (!%p152_p3), 7440  ;;  %s2701_s7 = sshll.u32 (!%p152_p3), %s3505_s12, 4 }
   0xc   : > { %v3390_v3 = vld [vmem:[%s4666_s1 + $0x80] sm:$0xff] (!%p152_p3)   ;;  %3027 = vmatpush3.bf16.msra.mxu0 (!%p152_p3), %v3389_v2  ;;  %v3394_v7 = vld [vmem:[%s4666_s1 + $0x88] sm:$0xff] (!%p152_p3)   ;;  %v3398_v11 = vld [vmem:[%s4666_s1 + $0x90] sm:$0xff] (!%p152_p3)   ;;  %p187_p6 = scmp.lt.s32.totalorder (!%p152_p3), %s2701_s7, 31 }
   0xd   : > { %3091 = vmatpush3.bf16.msra.mxu1 (!%p152_p3), %v3390_v3  ;;  %3028 = vmatprep.subr.bf16.mxu0 (!%p152_p3), %v3391_v4  ;;  %v3399_v12 = vld [vmem:[%s4666_s1 + $0x58] sm:$0xff] (!%p152_p3)   ;;  %v3403_v16 = vld [vmem:[%s4666_s1 + $0x60] sm:$0xff] (!%p152_p3)   ;;  %v3407_v20 = vld [vmem:[%s4666_s1 + $0x68] sm:$0xff] (!%p152_p3)  }
   0xe   : > { %3092 = vmatprep.subr.bf16.mxu1 (!%p152_p3), %v3392_v5  ;;  %v3400_v13 = vld [vmem:[%s4666_s1 + $0xd8] sm:$0xff] (!%p152_p3)   ;;  %v3404_v17 = vld [vmem:[%s4666_s1 + $0xe0] sm:$0xff] (!%p152_p3)   ;;  %v3408_v21 = vld [vmem:[%s4666_s1 + $0xe8] sm:$0xff] (!%p152_p3)  }
   0xf   : > { %v3401_v14 = vld [vmem:[%s4666_s1 + $0x18] sm:$0xff] (!%p152_p3)   ;;  %v3405_v18 = vld [vmem:[%s4666_s1 + $0x20] sm:$0xff] (!%p152_p3)   ;;  %v3409_v22 = vld [vmem:[%s4666_s1 + $0x28] sm:$0xff] (!%p152_p3)  }
  0x10   : > { %3029 = vmatpush3.bf16.msra.mxu0 %v3393_v6  ;;  %v3402_v15 = vld [vmem:[%s4666_s1 + $0x98] sm:$0xff]   ;;  %s4688_s13 = smov (!%p179_p5, %s3509_s13), 1  ;;  %v3406_v19 = vld [vmem:[%s4666_s1 + $0xa0] sm:$0xff]   ;;  %v3410_v23 = vld [vmem:[%s4666_s1 + $0xa8] sm:$0xff]   ;;  %s4690_s7 = smov (!%p187_p6, %s2701_s7), 31 }
  0x11   : > { %3093 = vmatpush3.bf16.msra.mxu1 %v3394_v7  ;;  %3030 = vmatprep.subr.bf16.mxu0 %v3395_v8  ;;  %s3346_s25 = smul.u32 216, %s4688_s13  ;;  %v3411_v24 = vld [vmem:[%s4666_s1 + $0x70] sm:$0xff]   ;;  %v3415_v28 = vld [vmem:[%s4666_s1 + $0x78] sm:$0xff]   ;;  %v3421_v54 = vld [vmem:[%s4666_s1 + $0x140] sm:$0xff]   ;;  %s2702_s12 = sshll.u32 %s4688_s13, 5 }
  0x12   : > { %3094 = vmatprep.subr.bf16.mxu1 %v3396_v9  ;;  %v3412_v25 = vld [vmem:[%s4666_s1 + $0xf0] sm:$0xff]   ;;  %v3416_v29 = vld [vmem:[%s4666_s1 + $0xf8] sm:$0xff]   ;;  %vm3710_vm4 = vmor %vm223_vm0, %vm224_vm1  ;;  %s190_s8 = sadd.s32 %s2702_s12, %s4690_s7 }
  0x13   : > { %v3413_v26 = vld [vmem:[%s4666_s1 + $0x30] sm:$0xff]   ;;  %s183_s10 = scalar_lea.vmem %s4665_s0, %s3346_s25  ;;  %v3417_v30 = vld [vmem:[%s4666_s1 + $0x38] sm:$0xff]   ;;  %vm3720_vm5 = vmor %vm450_vm2, %vm451_vm3  ;;  %s2703_s9 = sshll.u32 %s190_s8, 2 }
  0x14   : > { %3031 = vmatpush3.bf16.msra.mxu0 %v3397_v10  ;;  %v3414_v27 = vld [vmem:[%s4666_s1 + $0xb0] sm:$0xff]   ;;  %s3676_s24 = scalar_lea.vmem %s183_s10, %s2962_s5  ;;  %v3418_v31 = vld [vmem:[%s4666_s1 + $0xb8] sm:$0xff]   ;;  %v3422_v1 = vld [vmem:[%s4666_s1 + $0x1c0] sm:$0xff]   ;;  %s4634_s11 = scalar_lea.vmem %s4668_s3, %s2703_s9 }
  0x15   : > { %3095 = vmatpush3.bf16.msra.mxu1 %v3398_v11  ;;  %3032 = vmatprep.subr.bf16.mxu0 %v3399_v12  ;;  %v3685_v32 = vld [vmem:[%s3676_s24] sm:$0xf]  ;;  %v3688_v33 = vld [vmem:[%s3676_s24 + $0x4] sm:$0xf]  ;;  %v3691_v34 = vld [vmem:[%s3676_s24 + $0x8] sm:$0x1] }
  0x16   : > { %3096 = vmatprep.subr.bf16.mxu1 %v3400_v13  ;;  %v227_v35 = vshrl.u32 %v3685_v32, 16  ;;  %v230_v36 = vshll.u32 %v3685_v32, 16  ;;  %v236_v37 = vshll.u32 %v3688_v33, 16  ;;  %v240_v38 = vshrl.u32 %v3688_v33, 16  ;;  %v2717_v40 = vld [vmem:[%s3676_s24 + $0xc] sm:$0xf] }
  0x17   : > { %v246_v39 = vshll.u32 %v3691_v34, 16  ;;  %v3700_v43 = vld [vmem:[%s3676_s24 + $0x10] sm:$0xf]  ;;  %v538_v44 = vshrl.u32 %v2717_v40, 16  ;;  %v541_v45 = vshll.u32 %v2717_v40, 16  ;;  %v458_v61 = vrot.slane %v3691_v34, 5 }
  0x18   : > { %3033 = vmatpush3.bf16.msra.mxu0 %v3401_v14  ;;  %v229_v41 = vrot.slane %v227_v35, 4  ;;  %v232_v42 = vrot.slane %v230_v36, 5  ;;  %v238_v46 = vrot.slane %v236_v37, 5  ;;  %v242_v47 = vrot.slane %v240_v38, 4  ;;  %v418_v49 = vld [vmem:[%s3676_s24] sm:$0xe] }
  0x19   : > { %3097 = vmatpush3.bf16.msra.mxu1 %v3402_v15  ;;  %3034 = vmatprep.subr.bf16.mxu0 %v3403_v16  ;;  %v547_v48 = vshll.u32 %v3700_v43, 16  ;;  %v540_v51 = vrot.slane %v538_v44, 4  ;;  %v543_v52 = vrot.slane %v541_v45, 5  ;;  %v551_v53 = vshrl.u32 %v3700_v43, 16  ;;  %v3423_v9 = vld [vmem:[%s4666_s1 + $0x100] sm:$0xff]   ;;  %v3427_v16 = vld [vmem:[%s4666_s1 + $0x148] sm:$0xff]  }
  0x1a   : > { %3098 = vmatprep.subr.bf16.mxu1 %v3404_v17  ;;  %v233_v50 = vor.u32 %v232_v42, %v229_v41  ;;  %v243_v56 = vor.u32 %v242_v47, %v238_v46  ;;  %v248_v57 = vrot.slane %v246_v39, 5  ;;  %v2823_v59 = vcombine.low %v2717_v40, %v3700_v43  ;;  %v3424_v14 = vld [vmem:[%s4666_s1 + $0x180] sm:$0xff]   ;;  %v3747_v15 = vld [vmem:[%s3676_s24 + $0xc] sm:$0xf] }
  0x1b   : > { %v3714_v58 = vrot.slane %v547_v48, 5  ;;  %v544_v62 = vor.u32 %v543_v52, %v540_v51  ;;  %v553_v63 = vrot.slane %v551_v53, 4  ;;  %v763_v3 = vrot.slane %v3700_v43, 5  ;;  %v3429_v34 = vld [vmem:[%s4666_s1 + $0x108] sm:$0xff]  }
  0x1c   : > { %3035 = vmatpush3.bf16.msra.mxu0 %v3405_v18  ;;  %v234_v60 = vrot.slane %v233_v50, 4  ;;  %v244_v2 = vrot.slane %v243_v56, 4  ;;  %2149 = vmatprep.mubr.bf16.mxu1 %v2823_v59  ;;  %v2707_v4 = vrot.slane %v418_v49, 9  ;;  %v455_v5 = vrot.slane %v3688_v33, 5  ;;  %v419_v39 = vld [vmem:[%s3676_s24 + $0xc] sm:$0xe] }
  0x1d   : > { %3099 = vmatpush3.bf16.msra.mxu1 %v3406_v19  ;;  %3036 = vmatprep.subr.bf16.mxu0 %v3407_v20  ;;  %v3731_v7 = vrot.slane %v544_v62, 4  ;;  %v554_v8 = vor.u32 %v553_v63, %v3714_v58  ;;  %v2799_v11 = vcombine.low %v3685_v32, %v3688_v33  ;;  %v3759_v20 = vld [vmem:[%s3676_s24 + $0x10] sm:$0xf]  ;;  %v3773_v32 = vld [vmem:[%s3676_s24 + $0x1c] sm:$0xf]  ;;  %v3430_v40 = vld [vmem:[%s4666_s1 + $0x188] sm:$0xff]  }
  0x1e   : > { %3100 = vmatprep.subr.bf16.mxu1 %v3408_v21  ;;  %v239_v6 = vsel %vm3710_vm4, %v234_v60, %v238_v46  ;;  %v249_v10 = vsel %vm3710_vm4, %v244_v2, %v248_v57  ;;  %v456_v12 = vsel %vm3720_vm5, %v2707_v4, %v455_v5  ;;  %v457_v13 = vrot.slane %v455_v5, 4  ;;  %v216_v21 = vld [vmem:[%s3676_s24 + $0x14] sm:$0x1]  ;;  %v3810_v2 = vld [vmem:[%s3676_s24 + $0x18] sm:$0xf] }
  0x1f   : > { %v2807_v17 = vcombine.low %v239_v6, %v249_v10  ;;  %v550_v18 = vsel %vm3710_vm4, %v3731_v7, %v3714_v58  ;;  %v3756_v19 = vrot.slane %v554_v8, 4  ;;  %v575_v44 = vshrl.u32 %v3773_v32, 16  ;;  %v3433_v46 = vld [vmem:[%s4666_s1 + $0x150] sm:$0xff]   ;;  %v3813_v4 = vld [vmem:[%s3676_s24 + $0x1c] sm:$0xf] }
  0x20   : > { %3037 = vmatpush3.bf16.msra.mxu0 %v3409_v22  ;;  %v251_v22 = vshrl.u32 %v3747_v15, 16  ;;  %v3434_v50 = vld [vmem:[%s4666_s1 + $0x1d0] sm:$0xff]   ;;  %v2708_v51 = vrot.slane %v419_v39, 9  ;;  %v462_v52 = vrot.slane %v3759_v20, 5  ;;  %v465_v53 = vrot.slane %v216_v21, 5 }
  0x21   : > { %3101 = vmatpush3.bf16.msra.mxu1 %v3410_v23  ;;  %3038 = vmatprep.subr.bf16.mxu0 %v3411_v24  ;;  %v459_v23 = vsel %vm3720_vm5, %v457_v13, %v458_v61  ;;  %v254_v24 = vshll.u32 %v3747_v15, 16  ;;  %v3436_v61 = vld [vmem:[%s4666_s1 + $0x190] sm:$0xff]   ;;  %v217_v5 = vld [vmem:[%s3676_s24 + $0x20] sm:$0x1]  ;;  %v278_v10 = vshll.u32 %v3810_v2, 16 }
  0x22   : > { %3102 = vmatprep.subr.bf16.mxu1 %v3412_v25  ;;  %v260_v25 = vshll.u32 %v3759_v20, 16  ;;  %2052 = vmatprep.mubr.bf16.mxu0 %v2807_v17  ;;  %v463_v59 = vsel %vm3720_vm5, %v2708_v51, %v462_v52  ;;  %v464_v60 = vrot.slane %v462_v52, 4  ;;  %v420_v17 = vld [vmem:[%s3676_s24 + $0x18] sm:$0xe] }
  0x23   : > { %v256_v35 = vrot.slane %v254_v24, 5 }
  0x24   : > { %3039 = vmatpush3.bf16.msra.mxu0 %v3413_v26  ;;  %v264_v26 = vshrl.u32 %v3759_v20, 16  ;;  %v262_v36 = vrot.slane %v260_v25, 5  ;;  %v466_v8 = vsel %vm3720_vm5, %v464_v60, %v465_v53 }
  0x25   : > { %3103 = vmatpush3.bf16.msra.mxu1 %v3414_v27  ;;  %3040 = vmatprep.subr.bf16.mxu0 %v3415_v28  ;;  %v2719_v27 = vld [vmem:[%s3676_s24 + $0x18] sm:$0xf]  ;;  %v3428_v28 = vld [vmem:[%s4666_s1 + $0x1c8] sm:$0xff]   ;;  %v2816_v13 = vcombine.low %v463_v59, %v466_v8 }
  0x26   : > { %3104 = vmatprep.subr.bf16.mxu1 %v3416_v29  ;;  %v2815_v29 = vcombine.low %v456_v12, %v459_v23  ;;  %v562_v33 = vshrl.u32 %v2719_v27, 16  ;;  %v266_v37 = vrot.slane %v264_v26, 4  ;;  %v565_v38 = vshll.u32 %v2719_v27, 16  ;;  %v3822_v12 = vld [vmem:[%s3676_s24 + $0x28] sm:$0xf] }
  0x27   : > { %v2824_v45 = vcombine.low %v2719_v27, %v3773_v32 }
  0x28   : > { %3041 = vmatpush3.bf16.msra.mxu0 %v3417_v30  ;;  %v253_v30 = vrot.slane %v251_v22, 4  ;;  %v3782_v42 = vrot.slane %v562_v33, 4  ;;  %v267_v48 = vor.u32 %v266_v37, %v262_v36  ;;  %v3789_v49 = vrot.slane %v565_v38, 5 }
  0x29   : > { %3105 = vmatpush3.bf16.msra.mxu1 %v3418_v31  ;;  %3154 = vmatprep.subr.bf16.mxu0 %v3421_v54  ;;  %v270_v31 = vshll.u32 %v216_v21, 16  ;;  %v3435_v54 = vld [vmem:[%s4666_s1 + $0x110] sm:$0xff]   ;;  %v280_v22 = vrot.slane %v278_v10, 5  ;;  %v472_v38 = vrot.slane %v217_v5, 5 }
  0x2a   : > { %3218 = vmatprep.subr.bf16.mxu1 %v3422_v1  ;;  %v257_v47 = vor.u32 %v256_v35, %v253_v30  ;;  %v268_v57 = vrot.slane %v267_v48, 4  ;;  %v2800_v1 = vcombine.low %v3747_v15, %v3759_v20  ;;  %v288_v15 = vshrl.u32 %v3813_v4, 16  ;;  %v3439_v20 = vld [vmem:[%s4666_s1 + $0x158] sm:$0xff]  }
  0x2b   : > { %2053 = vmatmul.mubr.bf16.vlgmr.msra.gmra.mrb[0].mxu0 %v2799_v11  ;;  %v272_v41 = vrot.slane %v270_v31, 5  ;;  %v2721_v11 = vld [vmem:[%s3676_s24 + $0x24] sm:$0xf]  ;;  %v2709_v35 = vrot.slane %v420_v17, 9 }
  0x2c   : > { %2150 = vmatmul.mubr.bf16.vlgmr.msra.gmra.mrb[0].mxu1 %v2815_v29  ;;  %3155 = vmatpush3.bf16.msra.mxu0 %v3423_v9  ;;  %v258_v56 = vrot.slane %v257_v47, 4  ;;  %v275_v9 = vshrl.u32 %v3810_v2, 16  ;;  %v586_v23 = vshrl.u32 %v2721_v11, 16  ;;  %v589_v24 = vshll.u32 %v2721_v11, 16  ;;  %v3845_v47 = vld [vmem:[%s3676_s24 + $0x28] sm:$0xf] }
  0x2d   : > { %3219 = vmatpush3.bf16.msra.mxu1 %v3424_v14  ;;  %3156 = vmatprep.subr.bf16.mxu0 %v3427_v16  ;;  %v273_v63 = vsel %vm3710_vm4, %v268_v57, %v272_v41  ;;  %v284_v14 = vshll.u32 %v3813_v4, 16  ;;  %v294_v16 = vshll.u32 %v217_v5, 16  ;;  %v290_v26 = vrot.slane %v288_v15, 4  ;;  %v421_v5 = vld [vmem:[%s3676_s24 + $0x24] sm:$0xe] }
  0x2e   : > { %2157 = vmatprep.mubr.bf16.mxu1 %v2824_v45  ;;  %3220 = vmatprep.subr.bf16.mxu1 %v3428_v28  ;;  %v263_v62 = vsel %vm3710_vm4, %v258_v56, %v262_v36  ;;  %v277_v21 = vrot.slane %v275_v9, 4  ;;  %v599_v28 = vshrl.u32 %v3822_v12, 16  ;;  %v3831_v30 = vrot.slane %v586_v23, 4 }
  0x2f   : > { %v2808_v6 = vcombine.low %v263_v62, %v273_v63  ;;  %v286_v25 = vrot.slane %v284_v14, 5  ;;  %v296_v27 = vrot.slane %v294_v16, 5  ;;  %v3833_v31 = vrot.slane %v589_v24, 5  ;;  %v3863_v62 = vld [vmem:[%s3676_s24 + $0x34] sm:$0xf] }
  0x30   : > { %3157 = vmatpush3.bf16.msra.mxu0 %v3429_v34  ;;  %v281_v29 = vor.u32 %v280_v22, %v277_v21  ;;  %v2825_v33 = vcombine.low %v2721_v11, %v3822_v12  ;;  %v469_v36 = vrot.slane %v3813_v4, 5  ;;  %v308_v53 = vshll.u32 %v3845_v47, 16 }
  0x31   : > { %3221 = vmatpush3.bf16.msra.mxu1 %v3430_v40  ;;  %3158 = vmatprep.subr.bf16.mxu0 %v3433_v46  ;;  %v291_v34 = vor.u32 %v290_v26, %v286_v25  ;;  %v2801_v40 = vcombine.low %v3810_v2, %v3813_v4  ;;  %v3842_v46 = vld [vmem:[%s3676_s24 + $0x24] sm:$0xf]  ;;  %v312_v59 = vshrl.u32 %v3845_v47, 16  ;;  %v623_v14 = vshrl.u32 %v3863_v62, 16  ;;  %v3442_v26 = vld [vmem:[%s4666_s1 + $0x198] sm:$0xff]  }
  0x32   : > { %3222 = vmatprep.subr.bf16.mxu1 %v3434_v50  ;;  %2060 = vmatprep.mubr.bf16.mxu0 %v2808_v6  ;;  %v282_v37 = vrot.slane %v281_v29, 4  ;;  %v470_v41 = vsel %vm3720_vm5, %v2709_v35, %v469_v36  ;;  %v471_v45 = vrot.slane %v469_v36, 4  ;;  %v218_v50 = vld [vmem:[%s3676_s24 + $0x2c] sm:$0x1]  ;;  %v299_v51 = vshrl.u32 %v3842_v46, 16  ;;  %v3445_v29 = vld [vmem:[%s4666_s1 + $0x160] sm:$0xff]  }
  0x33   : > { %2061 = vmatmul.mubr.bf16.gmra.mrb[4].mxu0 %v2800_v1  ;;  %v292_v39 = vrot.slane %v291_v34, 4  ;;  %v302_v52 = vshll.u32 %v3842_v46, 16  ;;  %v318_v60 = vshll.u32 %v218_v50, 16  ;;  %v310_v6 = vrot.slane %v308_v53, 5 }
  0x34   : > { %3159 = vmatpush3.bf16.msra.mxu0 %v3435_v54  ;;  %2158 = vmatmul.mubr.bf16.gmra.mrb[4].mxu1 %v2816_v13  ;;  %v287_v48 = vsel %vm3710_vm4, %v282_v37, %v286_v25  ;;  %v3440_v54 = vld [vmem:[%s4666_s1 + $0x1d8] sm:$0xff]   ;;  %v473_v57 = vsel %vm3720_vm5, %v471_v45, %v472_v38  ;;  %v301_v2 = vrot.slane %v299_v51, 4  ;;  %v314_v8 = vrot.slane %v312_v59, 4  ;;  %v3889_v37 = vld [vmem:[%s3676_s24 + $0x30] sm:$0xf] }
  0x35   : > { %3223 = vmatpush3.bf16.msra.mxu1 %v3436_v61  ;;  %3160 = vmatprep.subr.bf16.mxu0 %v3439_v20  ;;  %v297_v56 = vsel %vm3710_vm4, %v292_v39, %v296_v27  ;;  %v2723_v61 = vld [vmem:[%s3676_s24 + $0x30] sm:$0xf]  ;;  %v2817_v1 = vcombine.low %v470_v41, %v473_v57  ;;  %v304_v4 = vrot.slane %v302_v52, 5  ;;  %v320_v9 = vrot.slane %v318_v60, 5  ;;  %v3441_v25 = vld [vmem:[%s4666_s1 + $0x118] sm:$0xff]   ;;  %v3446_v39 = vld [vmem:[%s4666_s1 + $0x1e0] sm:$0xff]  }
  0x36   : > { %2165 = vmatprep.mubr.bf16.mxu1 %v2825_v33  ;;  %v2809_v63 = vcombine.low %v287_v48, %v297_v56  ;;  %3224 = vmatprep.subr.bf16.mxu1 %v3440_v54  ;;  %v610_v10 = vshrl.u32 %v2723_v61, 16  ;;  %v613_v13 = vshll.u32 %v2723_v61, 16  ;;  %v2826_v15 = vcombine.low %v2723_v61, %v3863_v62  ;;  %v3892_v38 = vld [vmem:[%s3676_s24 + $0x34] sm:$0xf]  ;;  %v219_v41 = vld [vmem:[%s3676_s24 + $0x38] sm:$0x1] }
  0x37   : > { %v305_v11 = vor.u32 %v304_v4, %v301_v2  ;;  %v315_v16 = vor.u32 %v314_v8, %v310_v6  ;;  %v2710_v20 = vrot.slane %v421_v5, 9  ;;  %v476_v23 = vrot.slane %v3845_v47, 5  ;;  %v3447_v48 = vld [vmem:[%s4666_s1 + $0x120] sm:$0xff]   ;;  %v2725_v54 = vld [vmem:[%s3676_s24 + $0x3c] sm:$0xf] }
  0x38   : > { %2068 = vmatprep.mubr.bf16.mxu0 %v2809_v63  ;;  %v3868_v17 = vrot.slane %v610_v10, 4  ;;  %v3870_v22 = vrot.slane %v613_v13, 5  ;;  %v479_v24 = vrot.slane %v218_v50, 5  ;;  %v2802_v34 = vcombine.low %v3842_v46, %v3845_v47  ;;  %3161 = vmatpush3.bf16.msra.mxu0 %v3441_v25  ;;  %v3911_v56 = vld [vmem:[%s3676_s24 + $0x40] sm:$0xf] }
  0x39   : > { %v306_v21 = vrot.slane %v305_v11, 4  ;;  %v316_v27 = vrot.slane %v315_v16, 4  ;;  %v477_v35 = vsel %vm3720_vm5, %v2710_v20, %v476_v23  ;;  %v478_v36 = vrot.slane %v476_v23, 4  ;;  %3225 = vmatpush3.bf16.msra.mxu1 %v3442_v26  ;;  %3162 = vmatprep.subr.bf16.mxu0 %v3445_v29  ;;  %v422_v63 = vld [vmem:[%s3676_s24 + $0x30] sm:$0xe]  ;;  %v3451_v11 = vld [vmem:[%s4666_s1 + $0x168] sm:$0xff]  }
  0x3a   : > { %v323_v45 = vshrl.u32 %v3889_v37, 16  ;;  %v326_v46 = vshll.u32 %v3889_v37, 16  ;;  %v332_v47 = vshll.u32 %v3892_v38, 16  ;;  %v336_v52 = vshrl.u32 %v3892_v38, 16  ;;  %3226 = vmatprep.subr.bf16.mxu1 %v3446_v39  ;;  %v3453_v26 = vld [vmem:[%s4666_s1 + $0x128] sm:$0xff]   ;;  %v3457_v39 = vld [vmem:[%s4666_s1 + $0x170] sm:$0xff]  }
  0x3b   : > { %2069 = vmatmul.mubr.bf16.gmra.mrb[8].mxu0 %v2801_v40  ;;  %v311_v33 = vsel %vm3710_vm4, %v306_v21, %v310_v6  ;;  %v321_v40 = vsel %vm3710_vm4, %v316_v27, %v320_v9  ;;  %v480_v51 = vsel %vm3720_vm5, %v478_v36, %v479_v24  ;;  %v342_v53 = vshll.u32 %v219_v41, 16  ;;  %v3452_v21 = vld [vmem:[%s4666_s1 + $0x1e8] sm:$0xff]   ;;  %v3941_v36 = vld [vmem:[%s3676_s24 + $0x3c] sm:$0xf] }
  0x3c   : > { %2166 = vmatmul.mubr.bf16.gmra.mrb[8].mxu1 %v2817_v1  ;;  %v2810_v50 = vcombine.low %v311_v33, %v321_v40  ;;  %v2818_v57 = vcombine.low %v477_v35, %v480_v51  ;;  %v325_v59 = vrot.slane %v323_v45, 4  ;;  %v328_v60 = vrot.slane %v326_v46, 5  ;;  %v3448_v1 = vld [vmem:[%s4666_s1 + $0x1a0] sm:$0xff]   ;;  %3163 = vmatpush3.bf16.msra.mxu0 %v3447_v48  ;;  %v3454_v29 = vld [vmem:[%s4666_s1 + $0x1a8] sm:$0xff]  }
  0x3d   : > { %2173 = vmatprep.mubr.bf16.mxu1 %v2826_v15  ;;  %v334_v61 = vrot.slane %v332_v47, 5  ;;  %v338_v2 = vrot.slane %v336_v52, 4  ;;  %v344_v4 = vrot.slane %v342_v53, 5  ;;  %v634_v5 = vshrl.u32 %v2725_v54, 16  ;;  %3227 = vmatpush3.bf16.msra.mxu1 %v3448_v1  ;;  %v3951_v45 = vld [vmem:[%s3676_s24 + $0x40] sm:$0xf] }
  0x3e   : > { %2076 = vmatprep.mubr.bf16.mxu0 %v2810_v50  ;;  %v637_v6 = vshll.u32 %v2725_v54, 16  ;;  %v329_v8 = vor.u32 %v328_v60, %v325_v59  ;;  %v647_v9 = vshrl.u32 %v3911_v56, 16  ;;  %v2827_v10 = vcombine.low %v2725_v54, %v3911_v56  ;;  %3164 = vmatprep.subr.bf16.mxu0 %v3451_v11  ;;  %v220_v46 = vld [vmem:[%s3676_s24 + $0x44] sm:$0x1]  ;;  %v2727_v54 = vld [vmem:[%s3676_s24 + $0x48] sm:$0xf] }
  0x3f   : > { %v339_v13 = vor.u32 %v338_v2, %v334_v61  ;;  %v3922_v15 = vrot.slane %v634_v5, 4  ;;  %v2711_v20 = vrot.slane %v422_v63, 9  ;;  %v483_v24 = vrot.slane %v3892_v38, 5  ;;  %3228 = vmatprep.subr.bf16.mxu1 %v3452_v21  ;;  %v3458_v63 = vld [vmem:[%s4666_s1 + $0x1f0] sm:$0xff]  }
  0x40   : > { %v3924_v16 = vrot.slane %v637_v6, 5  ;;  %v330_v23 = vrot.slane %v329_v8, 4  ;;  %v486_v25 = vrot.slane %v219_v41, 5  ;;  %3165 = vmatpush3.bf16.msra.mxu0 %v3453_v26  ;;  %v2803_v41 = vcombine.low %v3889_v37, %v3892_v38 }
  0x41   : > { %v340_v27 = vrot.slane %v339_v13, 4  ;;  %v485_v35 = vrot.slane %v483_v24, 4  ;;  %v347_v47 = vshrl.u32 %v3941_v36, 16  ;;  %v350_v48 = vshll.u32 %v3941_v36, 16  ;;  %3229 = vmatpush3.bf16.msra.mxu1 %v3454_v29  ;;  %3166 = vmatprep.subr.bf16.mxu0 %v3457_v39  ;;  %v3459_v29 = vld [vmem:[%s4666_s1 + $0x130] sm:$0xff]  }
  0x42   : > { %v335_v33 = vsel %vm3710_vm4, %v330_v23, %v334_v61  ;;  %v356_v52 = vshll.u32 %v3951_v45, 16  ;;  %v360_v53 = vshrl.u32 %v3951_v45, 16  ;;  %v366_v60 = vshll.u32 %v220_v46, 16  ;;  %v423_v61 = vld [vmem:[%s3676_s24 + $0x3c] sm:$0xe]  ;;  %3230 = vmatprep.subr.bf16.mxu1 %v3458_v63 }
  0x43   : > { %2077 = vmatmul.mubr.bf16.gmra.mrb[12].mxu0 %v2802_v34  ;;  %v484_v34 = vsel %vm3720_vm5, %v2711_v20, %v483_v24  ;;  %v345_v40 = vsel %vm3710_vm4, %v340_v27, %v344_v4  ;;  %v487_v51 = vsel %vm3720_vm5, %v485_v35, %v486_v25  ;;  %v349_v38 = vrot.slane %v347_v47, 4  ;;  %v3460_v47 = vld [vmem:[%s4666_s1 + $0x1b0] sm:$0xff]  }
  0x44   : > { %2174 = vmatmul.mubr.bf16.gmra.mrb[12].mxu1 %v2818_v57  ;;  %v2811_v50 = vcombine.low %v335_v33, %v345_v40  ;;  %v3962_v57 = vld [vmem:[%s3676_s24 + $0x4c] sm:$0xf]  ;;  %v2819_v37 = vcombine.low %v484_v34, %v487_v51  ;;  %v352_v59 = vrot.slane %v350_v48, 5  ;;  %v358_v1 = vrot.slane %v356_v52, 5  ;;  %3167 = vmatpush3.bf16.msra.mxu0 %v3459_v29  ;;  %v3463_v52 = vld [vmem:[%s4666_s1 + $0x178] sm:$0xff]  }
  0x45   : > { %2181 = vmatprep.mubr.bf16.mxu1 %v2827_v10  ;;  %v362_v2 = vrot.slane %v360_v53, 4  ;;  %v658_v4 = vshrl.u32 %v2727_v54, 16  ;;  %v661_v5 = vshll.u32 %v2727_v54, 16  ;;  %v368_v8 = vrot.slane %v366_v60, 5  ;;  %v4012_v60 = vld [vmem:[%s3676_s24 + $0x58] sm:$0xf]  ;;  %3231 = vmatpush3.bf16.msra.mxu1 %v3460_v47 }
  0x46   : > { %2084 = vmatprep.mubr.bf16.mxu0 %v2811_v50  ;;  %v353_v6 = vor.u32 %v352_v59, %v349_v38  ;;  %v2828_v11 = vcombine.low %v2727_v54, %v3962_v57  ;;  %v2712_v24 = vrot.slane %v423_v61, 9  ;;  %v490_v25 = vrot.slane %v3951_v45, 5  ;;  %v3998_v50 = vld [vmem:[%s3676_s24 + $0x50] sm:$0x1]  ;;  %v2729_v59 = vld [vmem:[%s3676_s24 + $0x54] sm:$0xf]  ;;  %3168 = vmatprep.subr.bf16.mxu0 %v3463_v52 }
  0x47   : > { %v363_v13 = vor.u32 %v362_v2, %v358_v1  ;;  %v3970_v20 = vrot.slane %v658_v4, 4  ;;  %v3972_v21 = vrot.slane %v661_v5, 5  ;;  %v493_v26 = vrot.slane %v220_v46, 5  ;;  %v3990_v46 = vld [vmem:[%s3676_s24 + $0x4c] sm:$0xf]  ;;  %v3464_v5 = vld [vmem:[%s4666_s1 + $0x1f8] sm:$0xff]  }
  0x48   : > { %v354_v23 = vrot.slane %v353_v6, 4  ;;  %v568_v33 = vor.u32 %v3789_v49, %v3782_v42  ;;  %v2804_v35 = vcombine.low %v3941_v36, %v3951_v45  ;;  %v491_v39 = vsel %vm3720_vm5, %v2712_v24, %v490_v25  ;;  %v424_v4 = vld [vmem:[%s3676_s24 + $0x48] sm:$0xe]  ;;  %3232 = vmatprep.subr.bf16.mxu1 %v3464_v5  ;;  %v4041_v52 = vld [vmem:[%s4666_s1 + $0x200] sm:$0xff]   ;;  %v4062_v5 = vld [vmem:[%s3676_s24 + $0x58] sm:$0xf] }
  0x49   : > { %v364_v27 = vrot.slane %v363_v13, 4  ;;  %v492_v40 = vrot.slane %v490_v25, 4  ;;  %v380_v51 = vshll.u32 %v3990_v46, 16  ;;  %v390_v38 = vshll.u32 %v3998_v50, 16 }
  0x4a   : > { %v359_v34 = vsel %vm3710_vm4, %v354_v23, %v358_v1  ;;  %v685_v13 = vshll.u32 %v2729_v59, 16  ;;  %v2829_v25 = vcombine.low %v2729_v59, %v4012_v60 }
  0x4b   : > { %2085 = vmatmul.mubr.bf16.gmra.mrb[16].mxu0 %v2803_v41  ;;  %v3987_v41 = vld [vmem:[%s3676_s24 + $0x48] sm:$0xf]  ;;  %v369_v48 = vsel %vm3710_vm4, %v364_v27, %v368_v8  ;;  %v494_v54 = vsel %vm3720_vm5, %v492_v40, %v493_v26  ;;  %v382_v2 = vrot.slane %v380_v51, 5  ;;  %v392_v8 = vrot.slane %v390_v38, 5  ;;  %v3465_v26 = vld [vmem:[%s4666_s1 + $0x138] sm:$0xff]  }
  0x4c   : > { %2182 = vmatmul.mubr.bf16.gmra.mrb[16].mxu1 %v2819_v37  ;;  %v371_v36 = vshrl.u32 %v3987_v41, 16  ;;  %v374_v45 = vshll.u32 %v3987_v41, 16  ;;  %v2812_v53 = vcombine.low %v359_v34, %v369_v48  ;;  %v384_v37 = vshrl.u32 %v3990_v46, 16  ;;  %3169 = vmatpush3.bf16.msra.mxu0 %v3465_v26 }
  0x4d   : > { %2189 = vmatprep.mubr.bf16.mxu1 %v2828_v11  ;;  %v2820_v61 = vcombine.low %v491_v39, %v494_v54  ;;  %v682_v11 = vshrl.u32 %v2729_v59, 16  ;;  %v592_v27 = vor.u32 %v3833_v31, %v3831_v30  ;;  %v4027_v39 = vrot.slane %v685_v13, 5  ;;  %3298 = vmatprep.subr.bf16.mxu0 %v4041_v52 }
  0x4e   : > { %v373_v63 = vrot.slane %v371_v36, 4  ;;  %v376_v1 = vrot.slane %v374_v45, 5  ;;  %2092 = vmatprep.mubr.bf16.mxu0 %v2812_v53  ;;  %v386_v6 = vrot.slane %v384_v37, 4  ;;  %v2713_v40 = vrot.slane %v424_v4, 9 }
  0x4f   : > { %v4025_v34 = vrot.slane %v682_v11, 4  ;;  %v497_v48 = vrot.slane %v3990_v46, 5  ;;  %v500_v36 = vrot.slane %v3998_v50, 5  ;;  %v4036_v45 = vrot.slane %v763_v3, 4 }
  0x50   : > { %v377_v23 = vor.u32 %v376_v1, %v373_v63  ;;  %v387_v29 = vor.u32 %v386_v6, %v382_v2  ;;  %v616_v53 = vor.u32 %v3870_v22, %v3868_v17  ;;  %v640_v50 = vor.u32 %v3924_v16, %v3922_v15  ;;  %v4301_v22 = vld [vmem:[%s3676_s24 + $0x48] sm:$0xf] }
  0x51   : > { %v498_v38 = vsel %vm3720_vm5, %v2713_v40, %v497_v48  ;;  %v499_v59 = vrot.slane %v497_v48, 4  ;;  %v770_v63 = vrot.slane %v3773_v32, 5  ;;  %v2805_v4 = vcombine.low %v3987_v41, %v3990_v46  ;;  %v2731_v46 = vld [vmem:[%s3676_s24 + $0x60] sm:$0xf] }
  0x52   : > { %v378_v47 = vrot.slane %v377_v23, 4  ;;  %v388_v51 = vrot.slane %v387_v29, 4  ;;  %v408_v41 = vshrl.u32 %v4062_v5, 16  ;;  %v706_v24 = vshrl.u32 %v2731_v46, 16 }
  0x53   : > { %2093 = vmatmul.mubr.bf16.gmra.mrb[20].mxu0 %v2804_v35  ;;  %v3466_v35 = vld [vmem:[%s4666_s1 + $0x1b8] sm:$0xff]   ;;  %v501_v23 = vsel %vm3720_vm5, %v499_v59, %v500_v36 }
  0x54   : > { %2190 = vmatmul.mubr.bf16.gmra.mrb[20].mxu1 %v2820_v61  ;;  %v383_v37 = vsel %vm3710_vm4, %v378_v47, %v382_v2  ;;  %v4054_v61 = vld [vmem:[%s3676_s24 + $0x54] sm:$0xf]  ;;  %v393_v1 = vsel %vm3710_vm4, %v388_v51, %v392_v8  ;;  %v222_v2 = vld [vmem:[%s3676_s24 + $0x5c] sm:$0x1]  ;;  %v404_v8 = vshll.u32 %v4062_v5, 16  ;;  %v2821_v26 = vcombine.low %v498_v38, %v501_v23 }
  0x55   : > { %2197 = vmatprep.mubr.bf16.mxu1 %v2829_v25  ;;  %3233 = vmatpush3.bf16.msra.mxu1 %v3466_v35  ;;  %v395_v6 = vshrl.u32 %v4054_v61, 16  ;;  %v398_v11 = vshll.u32 %v4054_v61, 16  ;;  %v2813_v13 = vcombine.low %v383_v37, %v393_v1  ;;  %v4075_v25 = vld [vmem:[%s3676_s24 + $0x64] sm:$0xf]  ;;  %v414_v35 = vshll.u32 %v222_v2, 16 }
  0x56   : > { %3330 = vmatprep.subr.bf16.mxu1 %v4041_v52  ;;  %v425_v47 = vld [vmem:[%s3676_s24 + $0x54] sm:$0xe]  ;;  %v406_v48 = vrot.slane %v404_v8, 5  ;;  %v410_v51 = vrot.slane %v408_v41, 4  ;;  %v709_v37 = vshll.u32 %v2731_v46, 16  ;;  %v719_v1 = vshrl.u32 %v4075_v25, 16 }
  0x57   : > { %v397_v29 = vrot.slane %v395_v6, 4  ;;  %v400_v40 = vrot.slane %v398_v11, 5  ;;  %2100 = vmatprep.mubr.bf16.mxu0 %v2813_v13  ;;  %v416_v59 = vrot.slane %v414_v35, 5  ;;  %v2830_v10 = vcombine.low %v2731_v46, %v4075_v25 }
  0x58   : > { %v411_v54 = vor.u32 %v410_v51, %v406_v48  ;;  %v4080_v38 = vrot.slane %v706_v24, 4  ;;  %v4082_v6 = vrot.slane %v709_v37, 5  ;;  %v688_v11 = vor.u32 %v4027_v39, %v4025_v34  ;;  %v4107_v37 = vld [vmem:[%s3676_s24 + $0x18] sm:$0xf] }
  0x59   : > { %v401_v36 = vor.u32 %v400_v40, %v397_v29  ;;  %v504_v23 = vrot.slane %v4062_v5, 5  ;;  %v507_v8 = vrot.slane %v222_v2, 5  ;;  %v2806_v46 = vcombine.low %v4054_v61, %v4062_v5  ;;  %v2733_v2 = vld [vmem:[%s3676_s24 + $0x14] sm:$0x1] }
  0x5a   : > { %v412_v41 = vrot.slane %v411_v54, 4  ;;  %v772_v24 = vrot.slane %v770_v63, 4  ;;  %v2741_v54 = vld [vmem:[%s3676_s24 + $0xc] sm:$0xe]  ;;  %v4102_v61 = vrot.slane %v568_v33, 4  ;;  %v557_v35 = vshll.u32 %v2733_v2, 16 }
  0x5b   : > { %2101 = vmatmul.mubr.bf16.gmra.mrb[24].mxu0 %v2805_v4  ;;  %v402_v13 = vrot.slane %v401_v36, 4  ;;  %v2714_v4 = vrot.slane %v425_v47, 9  ;;  %v506_v40 = vrot.slane %v504_v23, 4  ;;  %v2749_v47 = vrot.slane %v2741_v54, 9 }
  0x5c   : > { %2198 = vmatmul.mubr.bf16.gmra.mrb[24].mxu1 %v2821_v26  ;;  %v712_v26 = vor.u32 %v4082_v6, %v4080_v38  ;;  %v417_v5 = vsel %vm3710_vm4, %v412_v41, %v416_v59  ;;  %v766_v51 = vrot.slane %v2733_v2, 5  ;;  %v846_v42 = vshrl.u32 %v4107_v37, 16 }
  0x5d   : > { %2205 = vmatprep.mubr.bf16.mxu1 %v2830_v10  ;;  %v407_v10 = vsel %vm3710_vm4, %v402_v13, %v406_v48  ;;  %v505_v29 = vsel %vm3720_vm5, %v2714_v4, %v504_v23  ;;  %v508_v36 = vsel %vm3720_vm5, %v506_v40, %v507_v8  ;;  %v4112_v13 = vld [vmem:[%s3676_s24 + $0x1c] sm:$0xf]  ;;  %v4115_v4 = vld [vmem:[%s3676_s24 + $0x20] sm:$0x1]  ;;  %v849_v49 = vshll.u32 %v4107_v37, 16 }
  0x5e   : > { %v2814_v48 = vcombine.low %v407_v10, %v417_v5  ;;  %v2822_v33 = vcombine.low %v505_v29, %v508_v36  ;;  %v559_v59 = vrot.slane %v557_v35, 5  ;;  %v764_v23 = vsel %vm3720_vm5, %v2749_v47, %v763_v3  ;;  %v2734_v29 = vld [vmem:[%s3676_s24 + $0x20] sm:$0x1]  ;;  %v2742_v5 = vld [vmem:[%s3676_s24 + $0x18] sm:$0xe] }
  0x5f   : > { %v767_v8 = vsel %vm3720_vm5, %v4036_v45, %v766_v51  ;;  %v848_v10 = vrot.slane %v846_v42, 4  ;;  %v851_v40 = vrot.slane %v849_v49, 5  ;;  %v855_v2 = vshll.u32 %v4112_v13, 16  ;;  %v4137_v35 = vld [vmem:[%s3676_s24 + $0x24] sm:$0xf] }
  0x60   : > { %2108 = vmatprep.mubr.bf16.mxu0 %v2814_v48  ;;  %v2839_v41 = vcombine.low %v764_v23, %v767_v8  ;;  %v859_v43 = vshrl.u32 %v4112_v13, 16  ;;  %v865_v54 = vshll.u32 %v4115_v4, 16  ;;  %v560_v3 = vsel %vm3710_vm4, %v3756_v19, %v559_v59  ;;  %v4145_v36 = vld [vmem:[%s3676_s24 + $0x28] sm:$0xf]  ;;  %v4148_v42 = vld [vmem:[%s3676_s24 + $0x2c] sm:$0x1] }
  0x61   : > { %v2847_v45 = vcombine.low %v4107_v37, %v4112_v13  ;;  %v852_v47 = vor.u32 %v851_v40, %v848_v10  ;;  %v857_v51 = vrot.slane %v855_v2, 5  ;;  %v2750_v48 = vrot.slane %v2742_v5, 9 }
  0x62   : > { %v861_v19 = vrot.slane %v859_v43, 4  ;;  %v867_v49 = vrot.slane %v865_v54, 5  ;;  %v773_v37 = vrot.slane %v2734_v29, 5  ;;  %v873_v58 = vshll.u32 %v4137_v35, 16 }
  0x63   : > { %2109 = vmatmul.mubr.bf16.gmra.mrb[28].mxu0 %v2806_v46  ;;  %v2831_v46 = vcombine.low %v550_v18, %v560_v3  ;;  %v853_v59 = vrot.slane %v852_v47, 4  ;;  %v771_v23 = vsel %vm3720_vm5, %v2750_v48, %v770_v63  ;;  %v879_v7 = vshll.u32 %v4145_v36, 16  ;;  %v4165_v63 = vld [vmem:[%s4666_s1 + $0x208] sm:$0xff]   ;;  %v4235_v48 = vld [vmem:[%s3676_s24 + $0x3c] sm:$0xf] }
  0x64   : > { %2206 = vmatmul.mubr.bf16.gmra.mrb[28].mxu1 %v2822_v33  ;;  %2246 = vmatprep.mubr.bf16.mxu0 %v2839_v41  ;;  %v870_v33 = vshrl.u32 %v4137_v35, 16  ;;  %v862_v18 = vor.u32 %v861_v19, %v857_v51  ;;  %v774_v8 = vsel %vm3720_vm5, %v772_v24, %v773_v37  ;;  %v883_v10 = vshrl.u32 %v4145_v36, 16  ;;  %v4168_v3 = vld [vmem:[%s3676_s24 + $0x2c] sm:$0x1]  ;;  %v2743_v19 = vld [vmem:[%s3676_s24 + $0x24] sm:$0xe] }
  0x65   : > { %v858_v40 = vsel %vm3710_vm4, %v853_v59, %v857_v51  ;;  %v2840_v2 = vcombine.low %v771_v23, %v774_v8  ;;  %v875_v43 = vrot.slane %v873_v58, 5  ;;  %v881_v54 = vrot.slane %v879_v7, 5  ;;  %v4181_v8 = vld [vmem:[%s3676_s24 + $0x30] sm:$0xf] }
  0x66   : > { %v872_v41 = vrot.slane %v870_v33, 4  ;;  %v863_v5 = vrot.slane %v862_v18, 4  ;;  %v885_v47 = vrot.slane %v883_v10, 4  ;;  %v889_v24 = vshll.u32 %v4148_v42, 16 }
  0x67   : > { %v571_v51 = vshll.u32 %v3773_v32, 16  ;;  %v577_v33 = vrot.slane %v575_v44, 4  ;;  %v581_v59 = vshll.u32 %v2734_v29, 16  ;;  %v2848_v18 = vcombine.low %v4137_v35, %v4145_v36 }
  0x68   : > { %v876_v37 = vor.u32 %v875_v43, %v872_v41  ;;  %v868_v23 = vsel %vm3710_vm4, %v863_v5, %v867_v49  ;;  %v886_v58 = vor.u32 %v885_v47, %v881_v54  ;;  %v891_v7 = vrot.slane %v889_v24, 5  ;;  %v4193_v5 = vld [vmem:[%s3676_s24 + $0x34] sm:$0xf] }
  0x69   : > { %v2855_v10 = vcombine.low %v858_v40, %v868_v23  ;;  %v573_v44 = vrot.slane %v571_v51, 5  ;;  %v583_v29 = vrot.slane %v581_v59, 5  ;;  %v2751_v41 = vrot.slane %v2743_v19, 9 }
  0x6a   : > { %v877_v32 = vrot.slane %v876_v37, 4  ;;  %v887_v49 = vrot.slane %v886_v58, 4  ;;  %v777_v43 = vrot.slane %v3822_v12, 5  ;;  %v780_v40 = vrot.slane %v4168_v3, 5  ;;  %v4201_v37 = vld [vmem:[%s3676_s24 + $0x38] sm:$0x1] }
  0x6b   : > { %2247 = vmatmul.mubr.bf16.vlgmr.msra.gmra.mrb[32].mxu0 %v2831_v46  ;;  %v4187_v46 = vld [vmem:[%s4666_s1 + $0x210] sm:$0xff]   ;;  %2343 = vmatprep.mubr.bf16.mxu1 %v2855_v10  ;;  %v574_v47 = vsel %vm3710_vm4, %v4102_v61, %v573_v44  ;;  %v578_v24 = vor.u32 %v577_v33, %v573_v44  ;;  %v894_v51 = vshrl.u32 %v4181_v8, 16  ;;  %v897_v58 = vshll.u32 %v4181_v8, 16  ;;  %v4221_v44 = vld [vmem:[%s4666_s1 + $0x218] sm:$0xff]  }
  0x6c   : > { %3299 = vmatpush3.bf16.msra.mxu0 %v4041_v52  ;;  %2254 = vmatprep.mubr.bf16.mxu0 %v2840_v2  ;;  %v882_v2 = vsel %vm3710_vm4, %v877_v32, %v881_v54  ;;  %v892_v19 = vsel %vm3710_vm4, %v887_v49, %v891_v7  ;;  %v778_v59 = vsel %vm3720_vm5, %v2751_v41, %v777_v43  ;;  %v779_v23 = vrot.slane %v777_v43, 4 }
  0x6d   : > { %3300 = vmatprep.subr.bf16.mxu0 %v4165_v63  ;;  %2344 = vmatmul.mubr.bf16.vlgmr.msra.gmra.mrb[32].mxu1 %v2847_v45  ;;  %v2856_v54 = vcombine.low %v882_v2, %v892_v19  ;;  %v579_v10 = vrot.slane %v578_v24, 4  ;;  %v896_v61 = vrot.slane %v894_v51, 4  ;;  %v903_v45 = vshll.u32 %v4193_v5, 16  ;;  %v4231_v2 = vld [vmem:[%s3676_s24 + $0x38] sm:$0x1] }
  0x6e   : > { %3338 = vmatpush3.bf16.msra.mxu1 %v4041_v52  ;;  %v781_v33 = vsel %vm3720_vm5, %v779_v23, %v780_v40  ;;  %v899_v7 = vrot.slane %v897_v58, 5  ;;  %v907_v32 = vshrl.u32 %v4193_v5, 16  ;;  %v913_v52 = vshll.u32 %v4201_v37, 16  ;;  %v2744_v24 = vld [vmem:[%s3676_s24 + $0x30] sm:$0xe] }
  0x6f   : > { %3331 = vmatprep.subr.bf16.mxu1 %v4165_v63  ;;  %2351 = vmatprep.mubr.bf16.mxu1 %v2856_v54  ;;  %v584_v49 = vsel %vm3710_vm4, %v579_v10, %v583_v29  ;;  %v2841_v41 = vcombine.low %v778_v59, %v781_v33  ;;  %v905_v43 = vrot.slane %v903_v45, 5  ;;  %v4228_v40 = vrot.slane %v592_v27, 4 }
  0x70   : > { %3301 = vmatpush3.bf16.msra.mxu0 %v4165_v63  ;;  %v2832_v51 = vcombine.low %v574_v47, %v584_v49  ;;  %v900_v19 = vor.u32 %v899_v7, %v896_v61  ;;  %v909_v23 = vrot.slane %v907_v32, 4  ;;  %v915_v58 = vrot.slane %v913_v52, 5  ;;  %v4254_v61 = vld [vmem:[%s3676_s24 + $0x40] sm:$0xf] }
  0x71   : > { %3302 = vmatprep.subr.bf16.mxu0 %v4187_v46  ;;  %v595_v29 = vshll.u32 %v3822_v12, 16  ;;  %v601_v59 = vrot.slane %v599_v28, 4  ;;  %v605_v30 = vshll.u32 %v4168_v3, 16  ;;  %v2849_v31 = vcombine.low %v4181_v8, %v4193_v5  ;;  %v4250_v12 = vld [vmem:[%s4666_s1 + $0x220] sm:$0xff]  }
  0x72   : > { %3339 = vmatpush3.bf16.msra.mxu1 %v4165_v63  ;;  %v901_v27 = vrot.slane %v900_v19, 4  ;;  %v910_v47 = vor.u32 %v909_v23, %v905_v43  ;;  %v2752_v54 = vrot.slane %v2744_v24, 9  ;;  %v784_v63 = vrot.slane %v3863_v62, 5  ;;  %v4270_v24 = vld [vmem:[%s3676_s24 + $0x44] sm:$0x1] }
  0x73   : > { %2255 = vmatmul.mubr.bf16.gmra.mrb[36].mxu0 %v2832_v51  ;;  %3332 = vmatprep.subr.bf16.mxu1 %v4187_v46  ;;  %v597_v28 = vrot.slane %v595_v29, 5  ;;  %v607_v3 = vrot.slane %v605_v30, 5  ;;  %v787_v10 = vrot.slane %v4231_v2, 5  ;;  %v918_v45 = vshrl.u32 %v4235_v48, 16 }
  0x74   : > { %3303 = vmatpush3.bf16.msra.mxu0 %v4187_v46  ;;  %2262 = vmatprep.mubr.bf16.mxu0 %v2841_v41  ;;  %v906_v33 = vsel %vm3710_vm4, %v901_v27, %v905_v43  ;;  %v911_v7 = vrot.slane %v910_v47, 4  ;;  %v785_v32 = vsel %vm3720_vm5, %v2752_v54, %v784_v63  ;;  %v786_v52 = vrot.slane %v784_v63, 4  ;;  %v2745_v63 = vld [vmem:[%s3676_s24 + $0x3c] sm:$0xe] }
  0x75   : > { %3304 = vmatprep.subr.bf16.mxu0 %v4221_v44  ;;  %2352 = vmatmul.mubr.bf16.gmra.mrb[36].mxu1 %v2848_v18  ;;  %v598_v49 = vsel %vm3710_vm4, %v4228_v40, %v597_v28  ;;  %v602_v41 = vor.u32 %v601_v59, %v597_v28  ;;  %v920_v51 = vrot.slane %v918_v45, 4  ;;  %v921_v35 = vshll.u32 %v4235_v48, 16 }
  0x76   : > { %3340 = vmatpush3.bf16.msra.mxu1 %v4187_v46  ;;  %v916_v18 = vsel %vm3710_vm4, %v911_v7, %v915_v58  ;;  %v788_v43 = vsel %vm3720_vm5, %v786_v52, %v787_v10  ;;  %v927_v19 = vshll.u32 %v4254_v61, 16  ;;  %v931_v40 = vshrl.u32 %v4254_v61, 16  ;;  %v3478_v58 = vld [vmem:[%s4666_s1 + $0x228] sm:$0xff]   ;;  %v4297_v7 = vld [vmem:[%s3676_s24 + $0x44] sm:$0x1] }
  0x77   : > { %3333 = vmatprep.subr.bf16.mxu1 %v4221_v44  ;;  %v2857_v46 = vcombine.low %v906_v33, %v916_v18  ;;  %v603_v23 = vrot.slane %v602_v41, 4  ;;  %v2842_v29 = vcombine.low %v785_v32, %v788_v43  ;;  %v923_v59 = vrot.slane %v921_v35, 5  ;;  %v4316_v18 = vld [vmem:[%s3676_s24 + $0x4c] sm:$0xf] }
  0x78   : > { %3305 = vmatpush3.bf16.msra.mxu0 %v4221_v44  ;;  %v929_v30 = vrot.slane %v927_v19, 5  ;;  %v933_v27 = vrot.slane %v931_v40, 4  ;;  %v937_v47 = vshll.u32 %v4270_v24, 16  ;;  %v617_v54 = vrot.slane %v616_v53, 4  ;;  %v4323_v40 = vld [vmem:[%s3676_s24 + $0x50] sm:$0x1] }
  0x79   : > { %3306 = vmatprep.subr.bf16.mxu0 %v4250_v12  ;;  %2359 = vmatprep.mubr.bf16.mxu1 %v2857_v46  ;;  %v608_v28 = vsel %vm3710_vm4, %v603_v23, %v607_v3  ;;  %v924_v10 = vor.u32 %v923_v59, %v920_v51  ;;  %v619_v45 = vshll.u32 %v3863_v62, 16  ;;  %v625_v33 = vrot.slane %v623_v14, 4 }
  0x7a   : > { %3341 = vmatpush3.bf16.msra.mxu1 %v4221_v44  ;;  %v2833_v32 = vcombine.low %v598_v49, %v608_v28  ;;  %v934_v52 = vor.u32 %v933_v27, %v929_v30  ;;  %v939_v41 = vrot.slane %v937_v47, 5  ;;  %v629_v17 = vshll.u32 %v4231_v2, 16  ;;  %v3480_v44 = vld [vmem:[%s4666_s1 + $0x230] sm:$0xff]  }
  0x7b   : > { %3334 = vmatprep.subr.bf16.mxu1 %v4250_v12  ;;  %v925_v53 = vrot.slane %v924_v10, 4  ;;  %v621_v3 = vrot.slane %v619_v45, 5  ;;  %v2850_v62 = vcombine.low %v4235_v48, %v4254_v61  ;;  %v2753_v14 = vrot.slane %v2745_v63, 9 }
  0x7c   : > { %3307 = vmatpush3.bf16.msra.mxu0 %v4250_v12  ;;  %v935_v2 = vrot.slane %v934_v52, 4  ;;  %v631_v49 = vrot.slane %v629_v17, 5  ;;  %v791_v51 = vrot.slane %v3911_v56, 5  ;;  %v794_v35 = vrot.slane %v4297_v7, 5 }
  0x7d   : > { %3308 = vmatprep.subr.bf16.mxu0 %v3478_v58  ;;  %2263 = vmatmul.mubr.bf16.gmra.mrb[40].mxu0 %v2833_v32  ;;  %v930_v48 = vsel %vm3710_vm4, %v925_v53, %v929_v30  ;;  %v622_v43 = vsel %vm3710_vm4, %v617_v54, %v621_v3  ;;  %v626_v19 = vor.u32 %v625_v33, %v621_v3  ;;  %v942_v8 = vshrl.u32 %v4301_v22, 16 }
  0x7e   : > { %2360 = vmatmul.mubr.bf16.gmra.mrb[40].mxu1 %v2849_v31  ;;  %2270 = vmatprep.mubr.bf16.mxu0 %v2842_v29  ;;  %v940_v31 = vsel %vm3710_vm4, %v935_v2, %v939_v41  ;;  %v792_v46 = vsel %vm3720_vm5, %v2753_v14, %v791_v51  ;;  %v793_v23 = vrot.slane %v791_v51, 4  ;;  %v945_v29 = vshll.u32 %v4301_v22, 16  ;;  %v2746_v41 = vld [vmem:[%s3676_s24 + $0x48] sm:$0xe]  ;;  %v4347_v2 = vld [vmem:[%s3676_s24 + $0x50] sm:$0x1] }
  0x7f   : > { %3342 = vmatpush3.bf16.msra.mxu1 %v4250_v12  ;;  %v2858_v59 = vcombine.low %v930_v48, %v940_v31  ;;  %v627_v30 = vrot.slane %v626_v19, 4  ;;  %v944_v27 = vrot.slane %v942_v8, 4  ;;  %v951_v47 = vshll.u32 %v4316_v18, 16  ;;  %v3482_v12 = vld [vmem:[%s4666_s1 + $0x238] sm:$0xff]   ;;  %v4350_v51 = vld [vmem:[%s3676_s24 + $0x54] sm:$0xf] }
  0x80   : > { %3335 = vmatprep.subr.bf16.mxu1 %v3478_v58  ;;  %3309 = vmatpush3.bf16.msra.mxu0 %v3478_v58  ;;  %v795_v54 = vsel %vm3720_vm5, %v793_v23, %v794_v35  ;;  %v947_v63 = vrot.slane %v945_v29, 5  ;;  %v955_v28 = vshrl.u32 %v4316_v18, 16  ;;  %v961_v10 = vshll.u32 %v4323_v40, 16 }
  0x81   : > { %3310 = vmatprep.subr.bf16.mxu0 %v3480_v44  ;;  %2367 = vmatprep.mubr.bf16.mxu1 %v2858_v59  ;;  %v632_v45 = vsel %vm3710_vm4, %v627_v30, %v631_v49  ;;  %v2843_v33 = vcombine.low %v792_v46, %v795_v54  ;;  %v953_v32 = vrot.slane %v951_v47, 5  ;;  %v641_v52 = vrot.slane %v640_v50, 4  ;;  %v4371_v59 = vld [vmem:[%s3676_s24 + $0x5c] sm:$0x1] }
  0x82   : > { %v2834_v17 = vcombine.low %v622_v43, %v632_v45  ;;  %v948_v53 = vor.u32 %v947_v63, %v944_v27  ;;  %v957_v3 = vrot.slane %v955_v28, 4  ;;  %v963_v14 = vrot.slane %v961_v10, 5 }
  0x83   : > { %3343 = vmatpush3.bf16.msra.mxu1 %v3478_v58  ;;  %v643_v49 = vshll.u32 %v3911_v56, 16  ;;  %v649_v35 = vrot.slane %v647_v9, 4  ;;  %v653_v15 = vshll.u32 %v4297_v7, 16  ;;  %v2851_v16 = vcombine.low %v4301_v22, %v4316_v18  ;;  %v4361_v9 = vld [vmem:[%s3676_s24 + $0x58] sm:$0xf] }
  0x84   : > { %3336 = vmatprep.subr.bf16.mxu1 %v3480_v44  ;;  %3311 = vmatpush3.bf16.msra.mxu0 %v3480_v44  ;;  %v949_v50 = vrot.slane %v948_v53, 4  ;;  %v958_v58 = vor.u32 %v957_v3, %v953_v32  ;;  %v2754_v48 = vrot.slane %v2746_v41, 9  ;;  %v798_v43 = vrot.slane %v3962_v57, 5 }
  0x85   : > { %3312 = vmatprep.subr.bf16.mxu0 %v3482_v12  ;;  %2271 = vmatmul.mubr.bf16.gmra.mrb[44].mxu0 %v2834_v17  ;;  %v645_v19 = vrot.slane %v643_v49, 5  ;;  %v655_v8 = vrot.slane %v653_v15, 5  ;;  %v801_v56 = vrot.slane %v4347_v2, 5  ;;  %v966_v7 = vshrl.u32 %v4350_v51, 16  ;;  %v2739_v15 = vld [vmem:[%s3676_s24 + $0x5c] sm:$0x1] }
  0x86   : > { %2368 = vmatmul.mubr.bf16.gmra.mrb[44].mxu1 %v2850_v62  ;;  %2278 = vmatprep.mubr.bf16.mxu0 %v2843_v33  ;;  %v954_v22 = vsel %vm3710_vm4, %v949_v50, %v953_v32  ;;  %v959_v62 = vrot.slane %v958_v58, 4  ;;  %v799_v31 = vsel %vm3720_vm5, %v2754_v48, %v798_v43  ;;  %v800_v46 = vrot.slane %v798_v43, 4 }
  0x87   : > { %3344 = vmatpush3.bf16.msra.mxu1 %v3480_v44  ;;  %v646_v23 = vsel %vm3710_vm4, %v641_v52, %v645_v19  ;;  %v650_v29 = vor.u32 %v649_v35, %v645_v19  ;;  %v968_v30 = vrot.slane %v966_v7, 4  ;;  %v969_v27 = vshll.u32 %v4350_v51, 16 }
  0x88   : > { %3337 = vmatprep.subr.bf16.mxu1 %v3482_v12  ;;  %3313 = vmatpush3.bf16.msra.mxu0 %v3482_v12  ;;  %v964_v44 = vsel %vm3710_vm4, %v959_v62, %v963_v14  ;;  %v802_v47 = vsel %vm3720_vm5, %v800_v46, %v801_v56  ;;  %v975_v54 = vshll.u32 %v4361_v9, 16  ;;  %v979_v63 = vshrl.u32 %v4361_v9, 16  ;;  %v4400_v46 = vld [vmem:[%s3676_s24 + $0x64] sm:$0xf] }
  0x89   : > { %v2859_v28 = vcombine.low %v954_v22, %v964_v44  ;;  %v651_v10 = vrot.slane %v650_v29, 4  ;;  %v2844_v45 = vcombine.low %v799_v31, %v802_v47  ;;  %v971_v33 = vrot.slane %v969_v27, 5 }
  0x8a   : > { %v977_v32 = vrot.slane %v975_v54, 5  ;;  %v981_v52 = vrot.slane %v979_v63, 4  ;;  %v985_v41 = vshll.u32 %v4371_v59, 16  ;;  %v1109_v17 = vrot.slane %v4371_v59, 5 }
  0x8b   : > { %3345 = vmatpush3.bf16.msra.mxu1 %v3482_v12  ;;  %2375 = vmatprep.mubr.bf16.mxu1 %v2859_v28  ;;  %v656_v53 = vsel %vm3710_vm4, %v651_v10, %v655_v8  ;;  %v972_v3 = vor.u32 %v971_v33, %v968_v30  ;;  %v4673_v14 = vor.u32 %v3972_v21, %v3970_v20  ;;  %v667_v35 = vshll.u32 %v3962_v57, 16  ;;  %v2747_v12 = vld [vmem:[%s3676_s24 + $0x54] sm:$0xe]  ;;  %v4396_v21 = vld [vmem:[%s3676_s24 + $0x60] sm:$0xf] }
  0x8c   : > { %v2835_v50 = vcombine.low %v646_v23, %v656_v53  ;;  %v982_v58 = vor.u32 %v981_v52, %v977_v32  ;;  %v987_v48 = vrot.slane %v985_v41, 5  ;;  %v4674_v43 = vshrl.u32 %v3962_v57, 16 }
  0x8d   : > { %v665_v49 = vrot.slane %v4673_v14, 4  ;;  %v973_v56 = vrot.slane %v972_v3, 4  ;;  %v669_v8 = vrot.slane %v667_v35, 5  ;;  %v677_v7 = vshll.u32 %v4347_v2, 16 }
  0x8e   : > { %2376 = vmatmul.mubr.bf16.gmra.mrb[48].mxu1 %v2851_v16  ;;  %v673_v19 = vrot.slane %v4674_v43, 4  ;;  %v2852_v20 = vcombine.low %v4350_v51, %v4361_v9  ;;  %2279 = vmatmul.mubr.bf16.gmra.mrb[48].mxu0 %v2835_v50  ;;  %v983_v22 = vrot.slane %v982_v58, 4  ;;  %v2755_v62 = vrot.slane %v2747_v12, 9  ;;  %v4407_v51 = vld [vmem:[%s3676_s24 + $0x68] sm:$0x1] }
  0x8f   : > { %v805_v16 = vrot.slane %v4012_v60, 5  ;;  %v808_v31 = vrot.slane %v2739_v15, 5  ;;  %2286 = vmatprep.mubr.bf16.mxu0 %v2844_v45  ;;  %v978_v57 = vsel %vm3710_vm4, %v973_v56, %v977_v32  ;;  %v670_v2 = vsel %vm3710_vm4, %v665_v49, %v669_v8  ;;  %v2748_v49 = vld [vmem:[%s3676_s24 + $0x60] sm:$0xe] }
  0x90   : > { %v674_v23 = vor.u32 %v673_v19, %v669_v8  ;;  %v679_v29 = vrot.slane %v677_v7, 5  ;;  %v988_v30 = vsel %vm3710_vm4, %v983_v22, %v987_v48  ;;  %v990_v47 = vshrl.u32 %v4396_v21, 16  ;;  %v2740_v48 = vld [vmem:[%s3676_s24 + $0x68] sm:$0x1]  ;;  %v4431_v22 = vld [vmem:[%s3676_s24 + $0x6c] sm:$0xf] }
  0x91   : > { %v806_v27 = vsel %vm3720_vm5, %v2755_v62, %v805_v16  ;;  %v807_v44 = vrot.slane %v805_v16, 4  ;;  %v2860_v54 = vcombine.low %v978_v57, %v988_v30  ;;  %v993_v28 = vshll.u32 %v4396_v21, 16 }
  0x92   : > { %v675_v63 = vrot.slane %v674_v23, 4  ;;  %v999_v10 = vshll.u32 %v4400_v46, 16  ;;  %v992_v33 = vrot.slane %v990_v47, 4  ;;  %v1003_v32 = vshrl.u32 %v4400_v46, 16 }
  0x93   : > { %v809_v45 = vsel %vm3720_vm5, %v807_v44, %v808_v31  ;;  %v1009_v52 = vshll.u32 %v4407_v51, 16  ;;  %2383 = vmatprep.mubr.bf16.mxu1 %v2860_v54  ;;  %v995_v3 = vrot.slane %v993_v28, 5  ;;  %v689_v58 = vrot.slane %v688_v11, 4  ;;  %v4447_v44 = vld [vmem:[%s3676_s24 + $0x74] sm:$0x1] }
  0x94   : > { %v680_v41 = vsel %vm3710_vm4, %v675_v63, %v679_v29  ;;  %v2845_v53 = vcombine.low %v806_v27, %v809_v45  ;;  %v1001_v14 = vrot.slane %v999_v10, 5  ;;  %v1005_v12 = vrot.slane %v1003_v32, 4 }
  0x95   : > { %v2836_v35 = vcombine.low %v670_v2, %v680_v41  ;;  %v1011_v50 = vrot.slane %v1009_v52, 5  ;;  %v996_v43 = vor.u32 %v995_v3, %v992_v33  ;;  %v691_v19 = vshll.u32 %v4012_v60, 16  ;;  %v4437_v2 = vld [vmem:[%s3676_s24 + $0x70] sm:$0xf] }
  0x96   : > { %2384 = vmatmul.mubr.bf16.gmra.mrb[52].mxu1 %v2852_v20  ;;  %v4675_v56 = vshrl.u32 %v4012_v60, 16  ;;  %v701_v7 = vshll.u32 %v2739_v15, 16  ;;  %v1006_v62 = vor.u32 %v1005_v12, %v1001_v14  ;;  %v2853_v20 = vcombine.low %v4396_v21, %v4400_v46 }
  0x97   : > { %2287 = vmatmul.mubr.bf16.gmra.mrb[52].mxu0 %v2836_v35  ;;  %v2756_v16 = vrot.slane %v2748_v49, 9  ;;  %v812_v34 = vrot.slane %v4075_v25, 5  ;;  %v997_v39 = vrot.slane %v996_v43, 4  ;;  %v693_v11 = vrot.slane %v691_v19, 5  ;;  %v2783_v49 = vld [vmem:[%s3676_s24 + $0x18] sm:$0xe] }
  0x98   : > { %v697_v8 = vrot.slane %v4675_v56, 4  ;;  %2294 = vmatprep.mubr.bf16.mxu0 %v2845_v53  ;;  %v703_v31 = vrot.slane %v701_v7, 5  ;;  %v815_v57 = vrot.slane %v2740_v48, 5  ;;  %v1007_v60 = vrot.slane %v1006_v62, 4  ;;  %v2787_v7 = vld [vmem:[%s3676_s24 + $0x48] sm:$0xe] }
  0x99   : > { %v813_v15 = vsel %vm3720_vm5, %v2756_v16, %v812_v34  ;;  %v814_v23 = vrot.slane %v812_v34, 4  ;;  %v1014_v29 = vshrl.u32 %v4431_v22, 16  ;;  %v1002_v21 = vsel %vm3710_vm4, %v997_v39, %v1001_v14 }
  0x9a   : > { %v694_v30 = vsel %vm3710_vm4, %v689_v58, %v693_v11  ;;  %v698_v27 = vor.u32 %v697_v8, %v693_v11  ;;  %v1017_v47 = vshll.u32 %v4431_v22, 16  ;;  %v1012_v54 = vsel %vm3710_vm4, %v1007_v60, %v1011_v50 }
  0x9b   : > { %v816_v63 = vsel %vm3720_vm5, %v814_v23, %v815_v57  ;;  %v1016_v28 = vrot.slane %v1014_v29, 4  ;;  %v1023_v10 = vshll.u32 %v4437_v2, 16  ;;  %v2861_v45 = vcombine.low %v1002_v21, %v1012_v54  ;;  %v2788_v21 = vld [vmem:[%s3676_s24 + $0x54] sm:$0xe] }
  0x9c   : > { %v699_v33 = vrot.slane %v698_v27, 4  ;;  %v2846_v32 = vcombine.low %v813_v15, %v816_v63  ;;  %v1019_v52 = vrot.slane %v1017_v47, 5  ;;  %v1027_v53 = vshrl.u32 %v4437_v2, 16  ;;  %v2785_v63 = vld [vmem:[%s3676_s24 + $0x30] sm:$0xe] }
  0x9d   : > { %v1025_v41 = vrot.slane %v1023_v10, 5  ;;  %v1033_v3 = vshll.u32 %v4447_v44, 16  ;;  %v713_v14 = vrot.slane %v712_v26, 4  ;;  %2391 = vmatprep.mubr.bf16.mxu1 %v2861_v45  ;;  %v715_v50 = vshll.u32 %v4075_v25, 16  ;;  %v2789_v10 = vld [vmem:[%s3676_s24 + $0x60] sm:$0xe] }
  0x9e   : > { %v704_v35 = vsel %vm3710_vm4, %v699_v33, %v703_v31  ;;  %v1020_v12 = vor.u32 %v1019_v52, %v1016_v28  ;;  %v721_v58 = vrot.slane %v719_v1, 4  ;;  %2392 = vmatmul.mubr.bf16.gmra.mrb[56].mxu1 %v2853_v20  ;;  %v1029_v19 = vrot.slane %v1027_v53, 4  ;;  %v2784_v1 = vld [vmem:[%s3676_s24 + $0x24] sm:$0xe] }
  0x9f   : > { %v2837_v43 = vcombine.low %v694_v30, %v704_v35  ;;  %v1035_v56 = vrot.slane %v1033_v3, 5  ;;  %v725_v8 = vshll.u32 %v2740_v48, 16  ;;  %v717_v6 = vrot.slane %v715_v50, 5 }
  0xa0   : > { %v1021_v38 = vrot.slane %v1020_v12, 4  ;;  %v2854_v26 = vcombine.low %v4431_v22, %v4437_v2  ;;  %v2791_v62 = vrot.slane %v2783_v49, 9  ;;  %v1030_v16 = vor.u32 %v1029_v19, %v1025_v41 }
  0xa1   : > { %2295 = vmatmul.mubr.bf16.gmra.mrb[56].mxu0 %v2837_v43  ;;  %v727_v34 = vrot.slane %v725_v8, 5  ;;  %v1071_v39 = vrot.slane %v4112_v13, 5  ;;  %v1074_v25 = vrot.slane %v4115_v4, 5  ;;  %v718_v20 = vsel %vm3710_vm4, %v713_v14, %v717_v6 }
  0xa2   : > { %2302 = vmatprep.mubr.bf16.mxu0 %v2846_v32  ;;  %v1026_v48 = vsel %vm3710_vm4, %v1021_v38, %v1025_v41  ;;  %v722_v11 = vor.u32 %v721_v58, %v717_v6  ;;  %v2795_v22 = vrot.slane %v2787_v7, 9  ;;  %v1031_v31 = vrot.slane %v1030_v16, 4  ;;  %v2786_v58 = vld [vmem:[%s3676_s24 + $0x3c] sm:$0xe]  ;;  %v2790_v7 = vld [vmem:[%s3676_s24 + $0x6c] sm:$0xe] }
  0xa3   : > { %v1072_v57 = vsel %vm3720_vm5, %v2791_v62, %v1071_v39  ;;  %v1073_v60 = vrot.slane %v1071_v39, 4  ;;  %v1099_v13 = vrot.slane %v4316_v18, 5  ;;  %v1102_v15 = vrot.slane %v4323_v40, 5 }
  0xa4   : > { %v723_v4 = vrot.slane %v722_v11, 4  ;;  %v2792_v23 = vrot.slane %v2784_v1, 9  ;;  %v1078_v29 = vrot.slane %v4145_v36, 5  ;;  %v1036_v30 = vsel %vm3710_vm4, %v1031_v31, %v1035_v56 }
  0xa5   : > { %v1075_v27 = vsel %vm3720_vm5, %v1073_v60, %v1074_v25  ;;  %v1100_v47 = vsel %vm3720_vm5, %v2795_v22, %v1099_v13  ;;  %v1101_v54 = vrot.slane %v1099_v13, 4  ;;  %v2862_v28 = vcombine.low %v1026_v48, %v1036_v30 }
  0xa6   : > { %v728_v18 = vsel %vm3710_vm4, %v723_v4, %v727_v34  ;;  %v2863_v40 = vcombine.low %v1072_v57, %v1075_v27  ;;  %v1079_v36 = vsel %vm3720_vm5, %v2792_v23, %v1078_v29  ;;  %v1080_v32 = vrot.slane %v1078_v29, 4  ;;  %v4536_v57 = vld [vmem:[%s4667_s2] ss:$0 sm:$0xff] }
  0xa7   : > { %v2838_v45 = vcombine.low %v718_v20, %v728_v18  ;;  %v1103_v33 = vsel %vm3720_vm5, %v1101_v54, %v1102_v15  ;;  %v2796_v52 = vrot.slane %v2788_v21, 9  ;;  %2399 = vmatprep.mubr.bf16.mxu1 %v2862_v28  ;;  %v1106_v53 = vrot.slane %v4361_v9, 5 }
  0xa8   : > { %v2867_v41 = vcombine.low %v1100_v47, %v1103_v33  ;;  %v2793_v3 = vrot.slane %v2785_v63, 9  ;;  %v1085_v55 = vrot.slane %v4193_v5, 5  ;;  %2400 = vmatmul.mubr.bf16.gmra.mrb[60].mxu1 %v2854_v26  ;;  %v4676_v14 = vrot.slane %v4148_v42, 5 }
  0xa9   : > { %2303 = vmatmul.mubr.bf16.gmra.mrb[60].mxu0 %v2838_v45  ;;  %v1088_v35 = vrot.slane %v4201_v37, 5  ;;  %v2797_v12 = vrot.slane %v2789_v10, 9  ;;  %v1113_v50 = vrot.slane %v4400_v46, 5  ;;  %v1107_v5 = vsel %vm3720_vm5, %v2796_v52, %v1106_v53 }
  0xaa   : > { %v1082_v49 = vsel %vm3720_vm5, %v1080_v32, %v4676_v14  ;;  %3314 = vmatprep.mubr.bf16.mxu0 %v2863_v40  ;;  %3322 = vmatprep.mubr.bf16.mxu1 %v2867_v41  ;;  %v1108_v43 = vrot.slane %v1106_v53, 4  ;;  %v1086_v42 = vsel %vm3720_vm5, %v2793_v3, %v1085_v55  ;;  %v1087_v19 = vrot.slane %v1085_v55, 4 }
  0xab   : > { %v2864_v9 = vcombine.low %v1079_v36, %v1082_v49  ;;  %v1114_v56 = vsel %vm3720_vm5, %v2797_v12, %v1113_v50  ;;  %v1115_v8 = vrot.slane %v1113_v50, 4  ;;  %v1116_v37 = vrot.slane %v4407_v51, 5 }
  0xac   : > { %v1110_v46 = vsel %vm3720_vm5, %v1108_v43, %v1109_v17  ;;  %v2794_v38 = vrot.slane %v2786_v58, 9  ;;  %v1092_v6 = vrot.slane %v4254_v61, 5  ;;  %v1089_v62 = vsel %vm3720_vm5, %v1087_v19, %v1088_v35 }
  0xad   : > { %v2868_v26 = vcombine.low %v1107_v5, %v1110_v46  ;;  %v1117_v16 = vsel %vm3720_vm5, %v1115_v8, %v1116_v37  ;;  %v1095_v34 = vrot.slane %v4270_v24, 5  ;;  %v2865_v39 = vcombine.low %v1086_v42, %v1089_v62 }
  0xae   : > { %v2869_v51 = vcombine.low %v1114_v56, %v1117_v16  ;;  %v1094_v25 = vrot.slane %v1092_v6, 4  ;;  %v2798_v1 = vrot.slane %v2790_v7, 9  ;;  %v1120_v59 = vrot.slane %v4437_v2, 5 }
  0xaf   : > { %v1123_v17 = vrot.slane %v4447_v44, 5  ;;  %v1093_v48 = vsel %vm3720_vm5, %v2794_v38, %v1092_v6 }
  0xb0   : > { %3323 = vmatmul.mubr.bf16.vlgmr.msra.gmra.mrb[64].mxu1 %v2868_v26  ;;  %v1122_v61 = vrot.slane %v1120_v59, 4  ;;  %v1096_v20 = vsel %vm3720_vm5, %v1094_v25, %v1095_v34  ;;  %v1121_v24 = vsel %vm3720_vm5, %v2798_v1, %v1120_v59 }
  0xb1   : > { %3315 = vmatmul.mubr.bf16.vlgmr.msra.gmra.mrb[64].mxu0 %v2864_v9  ;;  %3326 = vmatprep.mubr.bf16.mxu1 %v2869_v51  ;;  %v2866_v2 = vcombine.low %v1093_v48, %v1096_v20 }
  0xb2   : > { %3318 = vmatprep.mubr.bf16.mxu0 %v2865_v39  ;;  %v1124_v11 = vsel %vm3720_vm5, %v1122_v61, %v1123_v17 }
  0xb3   : > { %v2870_v22 = vcombine.low %v1121_v24, %v1124_v11 }
  0xb8   : > { %3327 = vmatmul.mubr.bf16.gmra.mrb[68].mxu1 %v2870_v22 }
  0xb9   : > { %3319 = vmatmul.mubr.bf16.gmra.mrb[68].mxu0 %v2866_v2 }
  0xfe   : > { %v3042_v44 = vpop.f32.mrb[0].mxu0 }
  0xff   : > { %v3106_v31 = vpop.f32.mrb[0].mxu1  ;;  %v3043_v60 = vpop.f32.mrb[1].mxu0 }
 0x100   : > { %v3044_v13 = vadd.f32 %v3043_v60, %v3042_v44  ;;  %v3107_v4 = vpop.f32.mrb[1].mxu1  ;;  %v3045_v15 = vpop.f32.mrb[2].mxu0 }
 0x101   : > { %v3108_v23 = vadd.f32 %v3107_v4, %v3106_v31  ;;  %v3109_v29 = vpop.f32.mrb[2].mxu1  ;;  %v3046_v21 = vpop.f32.mrb[3].mxu0 }
 0x102   : > { %v2055_v0 = vadd.f32 %v3044_v13, %v4536_v57  ;;  %v3047_v30 = vadd.f32 %v3046_v21, %v3045_v15  ;;  %v3110_v27 = vpop.f32.mrb[3].mxu1 }
 0x103   : > { %v3111_v47 = vadd.f32 %v3110_v27, %v3109_v29 }
 0x104   : > { %v4539_v54 = vadd.f32 %v3108_v23, %v2055_v0  ;;  %v2058_v63 = vadd.f32 %v3047_v30, %v4536_v57 }
 0x106   : > { %v4542_v28 = vadd.f32 %v3111_v47, %v2058_v63  ;;  %v3048_v18 = vpop.f32.mrb[4].mxu0 }
 0x107   : > { %v3112_v40 = vpop.f32.mrb[4].mxu1  ;;  %v3049_v36 = vpop.f32.mrb[5].mxu0 }
 0x108   : > { %v3113_v10 = vpop.f32.mrb[5].mxu1  ;;  %v3050_v45 = vadd.f32 %v3049_v36, %v3048_v18  ;;  %v3051_v32 = vpop.f32.mrb[6].mxu0 }
 0x109   : > { %v3114_v33 = vadd.f32 %v3113_v10, %v3112_v40  ;;  %v3115_v52 = vpop.f32.mrb[6].mxu1  ;;  %v3052_v41 = vpop.f32.mrb[7].mxu0 }
 0x10a   : > { %v3116_v53 = vpop.f32.mrb[7].mxu1  ;;  %v2063_v3 = vadd.f32 %v3050_v45, %v4536_v57  ;;  %v3053_v55 = vadd.f32 %v3052_v41, %v3051_v32 }
 0x10b   : > { %v3117_v14 = vadd.f32 %v3116_v53, %v3115_v52 }
 0x10c   : > { %v4545_v49 = vadd.f32 %v3114_v33, %v2063_v3  ;;  %v2066_v35 = vadd.f32 %v3053_v55, %v4536_v57 }
 0x10e   : > { %v4548_v12 = vadd.f32 %v3117_v14, %v2066_v35  ;;  %v3054_v58 = vpop.f32.mrb[8].mxu0 }
 0x10f   : > { %v3118_v50 = vpop.f32.mrb[8].mxu1  ;;  %v3055_v5 = vpop.f32.mrb[9].mxu0 }
 0x110   : > { %v3119_v9 = vpop.f32.mrb[9].mxu1  ;;  %v3056_v19 = vadd.f32 %v3055_v5, %v3054_v58  ;;  %v3057_v56 = vpop.f32.mrb[10].mxu0 }
 0x111   : > { %v3120_v43 = vadd.f32 %v3119_v9, %v3118_v50  ;;  %v3121_v42 = vpop.f32.mrb[10].mxu1  ;;  %v3058_v37 = vpop.f32.mrb[11].mxu0 }
 0x112   : > { %v3122_v8 = vpop.f32.mrb[11].mxu1  ;;  %v2071_v46 = vadd.f32 %v3056_v19, %v4536_v57  ;;  %v3059_v38 = vadd.f32 %v3058_v37, %v3057_v56 }
 0x113   : > { %v3123_v7 = vadd.f32 %v3122_v8, %v3121_v42 }
 0x114   : > { %v4551_v6 = vadd.f32 %v3120_v43, %v2071_v46  ;;  %v2074_v26 = vadd.f32 %v3059_v38, %v4536_v57 }
 0x116   : > { %v4554_v62 = vadd.f32 %v3123_v7, %v2074_v26  ;;  %v3060_v16 = vpop.f32.mrb[12].mxu0 }
 0x117   : > { %v3124_v34 = vpop.f32.mrb[12].mxu1  ;;  %v3061_v39 = vpop.f32.mrb[13].mxu0 }
 0x118   : > { %v3125_v51 = vpop.f32.mrb[13].mxu1  ;;  %v3062_v25 = vadd.f32 %v3061_v39, %v3060_v16  ;;  %v3063_v59 = vpop.f32.mrb[14].mxu0 }
 0x119   : > { %v3126_v1 = vadd.f32 %v3125_v51, %v3124_v34  ;;  %v3127_v17 = vpop.f32.mrb[14].mxu1  ;;  %v3064_v61 = vpop.f32.mrb[15].mxu0 }
 0x11a   : > { %v3128_v48 = vpop.f32.mrb[15].mxu1  ;;  %v2079_v20 = vadd.f32 %v3062_v25, %v4536_v57  ;;  %v3065_v24 = vadd.f32 %v3064_v61, %v3063_v59 }
 0x11b   : > { %v3129_v11 = vadd.f32 %v3128_v48, %v3127_v17 }
 0x11c   : > { %v4557_v2 = vadd.f32 %v3126_v1, %v2079_v20  ;;  %v2082_v22 = vadd.f32 %v3065_v24, %v4536_v57 }
 0x11e   : > { %v4560_v44 = vadd.f32 %v3129_v11, %v2082_v22  ;;  %v3066_v31 = vpop.f32.mrb[16].mxu0 }
 0x11f   : > { %v3130_v60 = vpop.f32.mrb[16].mxu1  ;;  %v3067_v13 = vpop.f32.mrb[17].mxu0 }
 0x120   : > { %v3131_v4 = vpop.f32.mrb[17].mxu1  ;;  %v3068_v15 = vadd.f32 %v3067_v13, %v3066_v31  ;;  %v3069_v29 = vpop.f32.mrb[18].mxu0 }
 0x121   : > { %v3132_v23 = vadd.f32 %v3131_v4, %v3130_v60  ;;  %v3133_v21 = vpop.f32.mrb[18].mxu1  ;;  %v3070_v0 = vpop.f32.mrb[19].mxu0 }
 0x122   : > { %v3134_v30 = vpop.f32.mrb[19].mxu1  ;;  %v2087_v27 = vadd.f32 %v3068_v15, %v4536_v57  ;;  %v3071_v47 = vadd.f32 %v3070_v0, %v3069_v29 }
 0x123   : > { %v3135_v63 = vadd.f32 %v3134_v30, %v3133_v21 }
 0x124   : > { %v4563_v18 = vadd.f32 %v3132_v23, %v2087_v27  ;;  %v2090_v40 = vadd.f32 %v3071_v47, %v4536_v57 }
 0x126   : > { %v4566_v36 = vadd.f32 %v3135_v63, %v2090_v40  ;;  %v3072_v10 = vpop.f32.mrb[20].mxu0 }
 0x127   : > { %v3136_v45 = vpop.f32.mrb[20].mxu1  ;;  %v3073_v33 = vpop.f32.mrb[21].mxu0 }
 0x128   : > { %v3137_v32 = vpop.f32.mrb[21].mxu1  ;;  %v3074_v52 = vadd.f32 %v3073_v33, %v3072_v10  ;;  %v3075_v53 = vpop.f32.mrb[22].mxu0 }
 0x129   : > { %v3138_v41 = vadd.f32 %v3137_v32, %v3136_v45  ;;  %v3139_v3 = vpop.f32.mrb[22].mxu1  ;;  %v3076_v55 = vpop.f32.mrb[23].mxu0 }
 0x12a   : > { %v3140_v14 = vpop.f32.mrb[23].mxu1  ;;  %v2095_v35 = vadd.f32 %v3074_v52, %v4536_v57  ;;  %v3077_v50 = vadd.f32 %v3076_v55, %v3075_v53 }
 0x12b   : > { %v3141_v58 = vadd.f32 %v3140_v14, %v3139_v3 }
 0x12c   : > { %v4569_v9 = vadd.f32 %v3138_v41, %v2095_v35  ;;  %v2098_v5 = vadd.f32 %v3077_v50, %v4536_v57 }
 0x12e   : > { %v4572_v43 = vadd.f32 %v3141_v58, %v2098_v5  ;;  %v3078_v42 = vpop.f32.mrb[24].mxu0 }
 0x12f   : > { %v3142_v19 = vpop.f32.mrb[24].mxu1  ;;  %v3079_v56 = vpop.f32.mrb[25].mxu0 }
 0x130   : > { %v3143_v8 = vpop.f32.mrb[25].mxu1  ;;  %v3080_v37 = vadd.f32 %v3079_v56, %v3078_v42  ;;  %v3081_v46 = vpop.f32.mrb[26].mxu0 }
 0x131   : > { %v3144_v7 = vadd.f32 %v3143_v8, %v3142_v19  ;;  %v3145_v38 = vpop.f32.mrb[26].mxu1  ;;  %v3082_v26 = vpop.f32.mrb[27].mxu0 }
 0x132   : > { %v3146_v16 = vpop.f32.mrb[27].mxu1  ;;  %v2103_v34 = vadd.f32 %v3080_v37, %v4536_v57  ;;  %v3083_v39 = vadd.f32 %v3082_v26, %v3081_v46 }
 0x133   : > { %v3147_v51 = vadd.f32 %v3146_v16, %v3145_v38 }
 0x134   : > { %v4575_v25 = vadd.f32 %v3144_v7, %v2103_v34  ;;  %v2106_v1 = vadd.f32 %v3083_v39, %v4536_v57 }
 0x136   : > { %v4578_v59 = vadd.f32 %v3147_v51, %v2106_v1  ;;  %v3084_v17 = vpop.f32.mrb[28].mxu0 }
 0x137   : > { %v3148_v61 = vpop.f32.mrb[28].mxu1  ;;  %v3085_v48 = vpop.f32.mrb[29].mxu0 }
 0x138   : > { %v3149_v20 = vpop.f32.mrb[29].mxu1  ;;  %v3086_v24 = vadd.f32 %v3085_v48, %v3084_v17  ;;  %v3087_v22 = vpop.f32.mrb[30].mxu0 }
 0x139   : > { %v3150_v11 = vadd.f32 %v3149_v20, %v3148_v61  ;;  %v3151_v31 = vpop.f32.mrb[30].mxu1  ;;  %v3088_v60 = vpop.f32.mrb[31].mxu0 }
 0x13a   : > { %v3152_v13 = vpop.f32.mrb[31].mxu1  ;;  %v2111_v4 = vadd.f32 %v3086_v24, %v4536_v57  ;;  %v3089_v15 = vadd.f32 %v3088_v60, %v3087_v22 }
 0x13b   : > { %v3153_v23 = vadd.f32 %v3152_v13, %v3151_v31 }
 0x13c   : > { %v4581_v29 = vadd.f32 %v3150_v11, %v2111_v4  ;;  %v2114_v21 = vadd.f32 %v3089_v15, %v4536_v57 }
 0x13e   : > { %v4584_v0 = vadd.f32 %v3153_v23, %v2114_v21  ;;  %v3170_v30 = vpop.f32.mrb[32].mxu0 }
 0x13f   : > { %v3171_v27 = vpop.f32.mrb[33].mxu0 }
 0x140   : > { %v3172_v47 = vadd.f32 %v3171_v27, %v3170_v30  ;;  %v3173_v63 = vpop.f32.mrb[34].mxu0  ;;  %v3234_v10 = vpop.f32.mrb[32].mxu1 }
 0x141   : > { %v3174_v40 = vpop.f32.mrb[35].mxu0  ;;  %v3235_v32 = vpop.f32.mrb[33].mxu1 }
 0x142   : > { %v2249_v45 = vadd.f32 %v3172_v47, %v4539_v54  ;;  %v3175_v33 = vadd.f32 %v3174_v40, %v3173_v63  ;;  %v3236_v52 = vadd.f32 %v3235_v32, %v3234_v10  ;;  %v3237_v41 = vpop.f32.mrb[34].mxu1 }
 0x143   : > { %v3238_v3 = vpop.f32.mrb[35].mxu1 }
 0x144   : > { %v2252_v53 = vadd.f32 %v3175_v33, %v4542_v28  ;;  %v3239_v55 = vadd.f32 %v3238_v3, %v3237_v41  ;;  %v4588_v14 = vadd.f32 %v3236_v52, %v2249_v45 }
 0x146   : > { %v3176_v57 = vpop.f32.mrb[36].mxu0  ;;  %v4590_v35 = vadd.f32 %v3239_v55, %v2252_v53 }
 0x147   : > { %v3177_v50 = vpop.f32.mrb[37].mxu0 }
 0x148   : > { %v3240_v58 = vpop.f32.mrb[36].mxu1  ;;  %v3178_v5 = vadd.f32 %v3177_v50, %v3176_v57  ;;  %v3179_v42 = vpop.f32.mrb[38].mxu0 }
 0x149   : > { %v3241_v19 = vpop.f32.mrb[37].mxu1  ;;  %v3180_v56 = vpop.f32.mrb[39].mxu0 }
 0x14a   : > { %v2257_v54 = vadd.f32 %v3178_v5, %v4545_v49  ;;  %v3242_v8 = vadd.f32 %v3241_v19, %v3240_v58  ;;  %v3243_v37 = vpop.f32.mrb[38].mxu1  ;;  %v3181_v7 = vadd.f32 %v3180_v56, %v3179_v42 }
 0x14b   : > { %v3244_v46 = vpop.f32.mrb[39].mxu1 }
 0x14c   : > { %v2260_v28 = vadd.f32 %v3181_v7, %v4548_v12  ;;  %v3245_v38 = vadd.f32 %v3244_v46, %v3243_v37  ;;  %v4594_v26 = vadd.f32 %v3242_v8, %v2257_v54 }
 0x14e   : > { %v4596_v16 = vadd.f32 %v3245_v38, %v2260_v28 }
 0x150   : > { %v3182_v34 = vpop.f32.mrb[40].mxu0 }
 0x151   : > { %v3246_v39 = vpop.f32.mrb[40].mxu1  ;;  %v3183_v51 = vpop.f32.mrb[41].mxu0 }
 0x152   : > { %v3247_v1 = vpop.f32.mrb[41].mxu1  ;;  %v3184_v17 = vadd.f32 %v3183_v51, %v3182_v34  ;;  %v3185_v48 = vpop.f32.mrb[42].mxu0 }
 0x153   : > { %v3248_v61 = vadd.f32 %v3247_v1, %v3246_v39  ;;  %v3249_v20 = vpop.f32.mrb[42].mxu1  ;;  %v3186_v49 = vpop.f32.mrb[43].mxu0 }
 0x154   : > { %v3250_v24 = vpop.f32.mrb[43].mxu1  ;;  %v2265_v11 = vadd.f32 %v3184_v17, %v4551_v6  ;;  %v3187_v22 = vadd.f32 %v3186_v49, %v3185_v48 }
 0x155   : > { %v3251_v31 = vadd.f32 %v3250_v24, %v3249_v20 }
 0x156   : > { %v2268_v12 = vadd.f32 %v3187_v22, %v4554_v62  ;;  %v4600_v60 = vadd.f32 %v3248_v61, %v2265_v11 }
 0x158   : > { %v3188_v13 = vpop.f32.mrb[44].mxu0  ;;  %v4602_v15 = vadd.f32 %v3251_v31, %v2268_v12 }
 0x159   : > { %v3252_v4 = vpop.f32.mrb[44].mxu1  ;;  %v3189_v23 = vpop.f32.mrb[45].mxu0 }
 0x15a   : > { %v3253_v21 = vpop.f32.mrb[45].mxu1  ;;  %v3190_v30 = vadd.f32 %v3189_v23, %v3188_v13  ;;  %v3191_v47 = vpop.f32.mrb[46].mxu0 }
 0x15b   : > { %v3254_v27 = vadd.f32 %v3253_v21, %v3252_v4  ;;  %v3255_v63 = vpop.f32.mrb[46].mxu1  ;;  %v3192_v40 = vpop.f32.mrb[47].mxu0 }
 0x15c   : > { %v3256_v10 = vpop.f32.mrb[47].mxu1  ;;  %v2273_v6 = vadd.f32 %v3190_v30, %v4557_v2  ;;  %v3193_v45 = vadd.f32 %v3192_v40, %v3191_v47 }
 0x15d   : > { %v3257_v33 = vadd.f32 %v3256_v10, %v3255_v63 }
 0x15e   : > { %v2276_v62 = vadd.f32 %v3193_v45, %v4560_v44  ;;  %v4606_v32 = vadd.f32 %v3254_v27, %v2273_v6 }
 0x160   : > { %v4608_v41 = vadd.f32 %v3257_v33, %v2276_v62 }
 0x161   : > { %v3258_v52 = vpop.f32.mrb[48].mxu1  ;;  %v3194_v3 = vpop.f32.mrb[48].mxu0 }
 0x162   : > { %v3259_v53 = vpop.f32.mrb[49].mxu1  ;;  %v3195_v50 = vpop.f32.mrb[49].mxu0 }
 0x163   : > { %v3260_v55 = vadd.f32 %v3259_v53, %v3258_v52  ;;  %v3261_v57 = vpop.f32.mrb[50].mxu1  ;;  %v3196_v5 = vadd.f32 %v3195_v50, %v3194_v3  ;;  %v3197_v42 = vpop.f32.mrb[50].mxu0 }
 0x164   : > { %v3262_v58 = vpop.f32.mrb[51].mxu1  ;;  %v3198_v56 = vpop.f32.mrb[51].mxu0 }
 0x165   : > { %v3263_v19 = vadd.f32 %v3262_v58, %v3261_v57  ;;  %v2281_v2 = vadd.f32 %v3196_v5, %v4563_v18  ;;  %v3199_v54 = vadd.f32 %v3198_v56, %v3197_v42 }
 0x167   : > { %v2284_v44 = vadd.f32 %v3199_v54, %v4566_v36  ;;  %v2378_v37 = vadd.f32 %v3260_v55, %v2281_v2 }
 0x169   : > { %v3264_v8 = vpop.f32.mrb[52].mxu1  ;;  %v4612_v34 = vadd.f32 %v3263_v19, %v2284_v44 }
 0x16a   : > { %v3265_v7 = vpop.f32.mrb[53].mxu1  ;;  %v3200_v46 = vpop.f32.mrb[52].mxu0 }
 0x16b   : > { %v3266_v28 = vadd.f32 %v3265_v7, %v3264_v8  ;;  %v3267_v38 = vpop.f32.mrb[54].mxu1  ;;  %v3201_v39 = vpop.f32.mrb[53].mxu0 }
 0x16c   : > { %v3268_v51 = vpop.f32.mrb[55].mxu1  ;;  %v3202_v1 = vadd.f32 %v3201_v39, %v3200_v46  ;;  %v3203_v17 = vpop.f32.mrb[54].mxu0 }
 0x16d   : > { %v3269_v61 = vadd.f32 %v3268_v51, %v3267_v38  ;;  %v3204_v48 = vpop.f32.mrb[55].mxu0 }
 0x16e   : > { %v2289_v20 = vadd.f32 %v3202_v1, %v4569_v9  ;;  %v3205_v18 = vadd.f32 %v3204_v48, %v3203_v17 }
 0x170   : > { %v2292_v49 = vadd.f32 %v3205_v18, %v4572_v43  ;;  %v2386_v36 = vadd.f32 %v3266_v28, %v2289_v20 }
 0x171   : > { %v3270_v24 = vpop.f32.mrb[56].mxu1 }
 0x172   : > { %v2389_v11 = vadd.f32 %v3269_v61, %v2292_v49  ;;  %v3271_v22 = vpop.f32.mrb[57].mxu1 }
 0x173   : > { %v3272_v12 = vadd.f32 %v3271_v22, %v3270_v24  ;;  %v3273_v13 = vpop.f32.mrb[58].mxu1 }
 0x174   : > { %v3206_v31 = vpop.f32.mrb[56].mxu0  ;;  %v3274_v23 = vpop.f32.mrb[59].mxu1 }
 0x175   : > { %v3207_v4 = vpop.f32.mrb[57].mxu0  ;;  %v3275_v27 = vadd.f32 %v3274_v23, %v3273_v13 }
 0x176   : > { %v3208_v21 = vadd.f32 %v3207_v4, %v3206_v31  ;;  %v3209_v30 = vpop.f32.mrb[58].mxu0 }
 0x177   : > { %v3210_v47 = vpop.f32.mrb[59].mxu0 }
 0x178   : > { %v2297_v63 = vadd.f32 %v3208_v21, %v4575_v25  ;;  %v3211_v9 = vadd.f32 %v3210_v47, %v3209_v30 }
 0x17a   : > { %v2300_v43 = vadd.f32 %v3211_v9, %v4578_v59  ;;  %v4619_v40 = vadd.f32 %v3272_v12, %v2297_v63 }
 0x17b   : > { %v3276_v6 = vpop.f32.mrb[60].mxu1 }
 0x17c   : > { %v3212_v10 = vpop.f32.mrb[60].mxu0  ;;  %v4621_v45 = vadd.f32 %v3275_v27, %v2300_v43  ;;  %v3277_v62 = vpop.f32.mrb[61].mxu1 }
 0x17d   : > { %v3213_v33 = vpop.f32.mrb[61].mxu0  ;;  %v3278_v53 = vadd.f32 %v3277_v62, %v3276_v6  ;;  %v3279_v55 = vpop.f32.mrb[62].mxu1 }
 0x17e   : > { %v3214_v52 = vadd.f32 %v3213_v33, %v3212_v10  ;;  %v3215_v3 = vpop.f32.mrb[62].mxu0  ;;  %v3280_v25 = vpop.f32.mrb[63].mxu1 }
 0x17f   : > { %v3216_v57 = vpop.f32.mrb[63].mxu0  ;;  %v3281_v59 = vadd.f32 %v3280_v25, %v3279_v55 }
 0x180   : > { %v2305_v50 = vadd.f32 %v3214_v52, %v4581_v29  ;;  %v3217_v58 = vadd.f32 %v3216_v57, %v3215_v3 }
 0x182   : > { %v2308_v5 = vadd.f32 %v3217_v58, %v4584_v0  ;;  %v2402_v42 = vadd.f32 %v3278_v53, %v2305_v50 }
 0x183   : > { %v3324_v56 = vpop.f32.mrb[64].mxu1 }
 0x184   : > { %v3316_v19 = vpop.f32.mrb[64].mxu0  ;;  %v2405_v2 = vadd.f32 %v3281_v59, %v2308_v5  ;;  %v2483_v44 = vadd.f32 %v3324_v56, %v2386_v36  ;;  %v2474_v7 = vpop.f32.mrb[65].mxu1 }
 0x185   : > { %v2451_v54 = vadd.f32 %v3316_v19, %v4594_v26  ;;  %v2442_v8 = vpop.f32.mrb[65].mxu0  ;;  %v2475_v28 = vadd.f32 %v2474_v7, %v2378_v37  ;;  %v3325_v38 = vpop.f32.mrb[66].mxu1 }
 0x186   : > { %v2443_v46 = vadd.f32 %v2442_v8, %v4588_v14  ;;  %v3317_v29 = vpop.f32.mrb[66].mxu0  ;;  %v2486_v51 = vadd.f32 %v3325_v38, %v2389_v11  ;;  %v2477_v1 = vpop.f32.mrb[67].mxu1  ;;  %v2515_v26 = vmax.f32 %v2483_v44, 0.0 }
 0x187   : > { %v2454_v39 = vadd.f32 %v3317_v29, %v4596_v16  ;;  %v2445_v0 = vpop.f32.mrb[67].mxu0  ;;  %v2478_v61 = vadd.f32 %v2477_v1, %v4612_v34  ;;  %v2507_v48 = vmax.f32 %v2451_v54, 0.0  ;;  %v2513_v36 = vmax.f32 %v2475_v28, 0.0 }
 0x188   : > { %v2446_v17 = vadd.f32 %v2445_v0, %v4590_v35  ;;  %v2516_v18 = vmax.f32 %v2486_v51, 0.0  ;;  %v2505_v49 = vmax.f32 %v2443_v46, 0.0 }
 0x189   : > { %v2508_v20 = vmax.f32 %v2454_v39, 0.0  ;;  %v2514_v16 = vmax.f32 %v2478_v61, 0.0 }
 0x18a   : > { %v2506_v14 = vmax.f32 %v2446_v17, 0.0  ;;  %v3007_v37 = vpack.c.bf16 %v2516_v18, %v2515_v26 }
 0x18b   : > { %v2987_v35 = vpack.c.bf16 %v2508_v20, %v2507_v48  ;;  %v3002_v24 = vpack.c.bf16 %v2514_v16, %v2513_v36  ;;  %v3328_v22 = vpop.f32.mrb[68].mxu1 }
 0x18c   : > { %v2982_v34 = vpack.c.bf16 %v2506_v14, %v2505_v49  ;;  %v3320_v11 = vpop.f32.mrb[68].mxu0  ;;  %3023 = vst [vmem:[%s4634_s11 + $0x28] sm:$0xff] %v3007_v37   ;;  %v2499_v12 = vadd.f32 %v3328_v22, %v2402_v42  ;;  %v2490_v4 = vpop.f32.mrb[69].mxu1 }
 0x18d   : > { %3019 = vst [vmem:[%s4634_s11 + $0x8] sm:$0xff] %v2987_v35   ;;  %v2467_v31 = vadd.f32 %v3320_v11, %v4606_v32  ;;  %v2458_v13 = vpop.f32.mrb[69].mxu0  ;;  %3022 = vst [vmem:[%s4634_s11 + $0x20] sm:$0xff] %v3002_v24   ;;  %v2491_v21 = vadd.f32 %v2490_v4, %v4619_v40  ;;  %v3329_v27 = vpop.f32.mrb[70].mxu1 }
 0x18e   : > { %2983 = vst [vmem:[%s4634_s11] sm:$0xff] %v2982_v34   ;;  %v2459_v23 = vadd.f32 %v2458_v13, %v4600_v60  ;;  %v3321_v30 = vpop.f32.mrb[70].mxu0  ;;  %v2502_v63 = vadd.f32 %v3329_v27, %v2405_v2  ;;  %v2493_v43 = vpop.f32.mrb[71].mxu1  ;;  %v2519_v33 = vmax.f32 %v2499_v12, 0.0 }
 0x18f   : > { %v2470_v47 = vadd.f32 %v3321_v30, %v4608_v41  ;;  %v2461_v9 = vpop.f32.mrb[71].mxu0  ;;  %v2494_v10 = vadd.f32 %v2493_v43, %v4621_v45  ;;  %v2511_v6 = vmax.f32 %v2467_v31, 0.0  ;;  %v2517_v52 = vmax.f32 %v2491_v21, 0.0 }
 0x190   : > { %v2462_v32 = vadd.f32 %v2461_v9, %v4602_v15  ;;  %v2520_v62 = vmax.f32 %v2502_v63, 0.0  ;;  %v2509_v40 = vmax.f32 %v2459_v23, 0.0 }
 0x191   : > { %v2512_v60 = vmax.f32 %v2470_v47, 0.0  ;;  %v2518_v3 = vmax.f32 %v2494_v10, 0.0 }
 0x192   : > { %v2510_v53 = vmax.f32 %v2462_v32, 0.0  ;;  %v3017_v55 = vpack.c.bf16 %v2520_v62, %v2519_v33 }
 0x193   : > { %v2997_v41 = vpack.c.bf16 %v2512_v60, %v2511_v6  ;;  %v3012_v25 = vpack.c.bf16 %v2518_v3, %v2517_v52 }
 0x194   : > { %v2992_v57 = vpack.c.bf16 %v2510_v53, %v2509_v40  ;;  %3025 = vst [vmem:[%s4634_s11 + $0x38] sm:$0xff] %v3017_v55  }
 0x195   : > { %3021 = vst [vmem:[%s4634_s11 + $0x18] sm:$0xff] %v2997_v41   ;;  %3024 = vst [vmem:[%s4634_s11 + $0x30] sm:$0xff] %v3012_v25  }
 0x196   : > { %3020 = vst [vmem:[%s4634_s11 + $0x10] sm:$0xff] %v2992_v57  }
 0x197 PF: > { %s13_s16 = sadd.s32 1, %s3521_s16   ;;  %s4677_s12 = smov %s3513_s14 }
 0x198   : > { %p10_p7 = scmp.ge.s32.totalorder %s13_s16, 6   ;;  %s4678_s13 = smov %s3517_s15 }
 0x199   : > { %s4679_s14 = smov %s4682_s17  ;;  %s4680_s15 = smov %s4686_s18 }
 0x19a   :  { %12 = sbr.rel (!%p10_p7) target bundleno = 3 (0x3), region = 65 }

</bundles_post_ra>
